<compile_context>
chip_gen: v6e
topology: v6e:2x2x1
jax: 0.10.0
libtpu: 0.0.40
codegen_flags: <defaults>
</compile_context>

<pallas_src>
import functools

import jax
import jax.numpy as jnp
from jax.experimental import pallas as pl
from jax.experimental.pallas import tpu as pltpu

IN_NUM = 6
HID = 100
IN_PAD = 8      # 6 features -> 8 lanes
HID_PAD = 128   # 100 hidden -> 128 lanes


# ----------------------------------------------------------------------------
# Pallas kernel: 3 refinement iterations for one tile of S samples.
# Row layout (branch-major): rows [b*S, (b+1)*S) = branch b of samples 0..S-1.
# ----------------------------------------------------------------------------
def _mlp_iterative_kernel(B_ref, pbar_ref, W1_ref, b1_ref, W2_ref, b2_ref,
                          W3_ref, b3_ref, Wp_ref, bp_ref, o_ref):
    f32 = jnp.float32
    m = pbar_ref.shape[1]          # 3 * s_tile rows
    s = m // 3                     # samples per tile (multiple of 8)

    # Loop-invariant reads, hoisted out of the unrolled stage loop.
    B_all = B_ref[0]               # (4, m, 8): coeff of p0, p1, p2, const
    B0, B1, B2, Bc = B_all[0], B_all[1], B_all[2], B_all[3]
    pbar = pbar_ref[0]             # (m, 1)  pbar_{branch(r)} of sample(r)
    Wp = Wp_ref[...]               # (m, 128) row r = predict_{branch(r)} weights
    bp = bp_ref[...]               # (m, 1)   predict_{branch(r)} bias

    # Iteration-0 p values are the per-sample p_bar's.
    p0 = pbar[0:s]                 # (s, 1) aligned sublane blocks
    p1 = pbar[s:2 * s]
    p2 = pbar[2 * s:3 * s]
    prob = pbar

    for k in range(3):             # three refinement stages (hidden{k}_*)
        # Broadcast each sample's p0/p1/p2 to all three branch row-blocks.
        q0 = jnp.concatenate([p0, p0, p0], axis=0)        # (m, 1)
        q1 = jnp.concatenate([p1, p1, p1], axis=0)
        q2 = jnp.concatenate([p2, p2, p2], axis=0)
        feat = q0 * B0 + q1 * B1 + q2 * B2 + Bc           # (m, 8), cols 0..5 real

        h = jnp.dot(feat, W1_ref[k], preferred_element_type=f32) + b1_ref[k]
        h = jnp.maximum(h, 0.0)
        h = jnp.dot(h, W2_ref[k], preferred_element_type=f32) + b2_ref[k]
        h = jnp.maximum(h, 0.0)
        h = jnp.dot(h, W3_ref[k], preferred_element_type=f32) + b3_ref[k]
        h = jnp.maximum(h, 0.0)

        # predict_{branch(r)} applied row-wise: lane reduce instead of matmul.
        logits = jnp.sum(h * Wp, axis=1, keepdims=True) + bp     # (m, 1)
        prob = jax.nn.sigmoid(logits) * pbar                      # (m, 1)

        p0 = prob[0:s]
        p1 = prob[s:2 * s]
        p2 = prob[2 * s:3 * s]

    o_ref[0] = prob


def run_kernel(B_tiles, pbar_tiles, packed):
    W1, b1, W2, b2, W3, b3, Wp, bp = packed
    t, _, m, _ = B_tiles.shape     # t tiles, m = 3 * s_tile rows per tile

    flops = int(t * 3 * 2 * (m * IN_PAD * HID_PAD
                             + 2 * m * HID_PAD * HID_PAD
                             + m * HID_PAD))
    bytes_accessed = int(sum(a.size * a.dtype.itemsize
                             for a in (B_tiles, pbar_tiles) + tuple(packed))
                         + t * m * 4)
    cost = pl.CostEstimate(flops=flops,
                           transcendentals=int(t * 3 * m),
                           bytes_accessed=bytes_accessed)

    grid_spec = pltpu.PrefetchScalarGridSpec(
        num_scalar_prefetch=0,
        grid=(t,),
        in_specs=[
            pl.BlockSpec((1, 4, m, 8), lambda i: (i, 0, 0, 0)),      # B (per tile)
            pl.BlockSpec((1, m, 1), lambda i: (i, 0, 0)),            # pbar rows
            pl.BlockSpec((3, IN_PAD, HID_PAD), lambda i: (0, 0, 0)),   # W1
            pl.BlockSpec((3, 1, HID_PAD), lambda i: (0, 0, 0)),        # b1
            pl.BlockSpec((3, HID_PAD, HID_PAD), lambda i: (0, 0, 0)),  # W2
            pl.BlockSpec((3, 1, HID_PAD), lambda i: (0, 0, 0)),        # b2
            pl.BlockSpec((3, HID_PAD, HID_PAD), lambda i: (0, 0, 0)),  # W3
            pl.BlockSpec((3, 1, HID_PAD), lambda i: (0, 0, 0)),        # b3
            pl.BlockSpec((m, HID_PAD), lambda i: (0, 0)),              # Wp rows
            pl.BlockSpec((m, 1), lambda i: (0, 0)),                    # bp rows
        ],
        out_specs=pl.BlockSpec((1, m, 1), lambda i: (i, 0, 0)),
    )
    return pl.pallas_call(
        _mlp_iterative_kernel,
        out_shape=jax.ShapeDtypeStruct((t, m, 1), jnp.float32),
        grid_spec=grid_spec,
        compiler_params=pltpu.CompilerParams(
            dimension_semantics=("parallel",)),
        cost_estimate=cost,
    )(B_tiles, pbar_tiles, W1, b1, W2, b2, W3, b3, Wp, bp)


# ----------------------------------------------------------------------------
# Parameter init (deterministic, PyTorch nn.Linear-style uniform)
# ----------------------------------------------------------------------------
def init_linear(key, fan_in, fan_out):
    kw, kb = jax.random.split(key)
    bound = 1.0 / float(fan_in) ** 0.5
    W = jax.random.uniform(kw, (fan_out, fan_in), jnp.float32, -bound, bound)
    b = jax.random.uniform(kb, (fan_out,), jnp.float32, -bound, bound)
    return W, b


def init_params(key):
    keys = jax.random.split(key, 12)
    params = {"hidden": [], "predict": []}
    i = 0
    for _ in range(3):  # hidden{0,1,2}_{1,2,3}
        l1 = init_linear(keys[i], IN_NUM, HID); i += 1
        l2 = init_linear(keys[i], HID, HID);   i += 1
        l3 = init_linear(keys[i], HID, HID);   i += 1
        params["hidden"].append((l1, l2, l3))
    for _ in range(3):  # predict0/1/2 (shared across stages)
        params["predict"].append(init_linear(keys[i], HID, 1)); i += 1
    return params


def pack_params(params, s_tile):
    """Pad / stack parameters for the kernel.  Called ONCE (hoisted)."""
    def pad_wt(W, in_pad, out_pad):            # store as (in, out)
        out = jnp.zeros((in_pad, out_pad), jnp.float32)
        return out.at[:W.shape[1], :W.shape[0]].set(W.T)

    def pad_b(b, out_pad):
        return jnp.zeros((1, out_pad), jnp.float32).at[0, :b.shape[0]].set(b)

    W1s, b1s, W2s, b2s, W3s, b3s = [], [], [], [], [], []
    for (l1, l2, l3) in params["hidden"]:
        W1s.append(pad_wt(l1[0], IN_PAD, HID_PAD));  b1s.append(pad_b(l1[1], HID_PAD))
        W2s.append(pad_wt(l2[0], HID_PAD, HID_PAD)); b2s.append(pad_b(l2[1], HID_PAD))
        W3s.append(pad_wt(l3[0], HID_PAD, HID_PAD)); b3s.append(pad_b(l3[1], HID_PAD))
    W1 = jnp.stack(W1s); b1 = jnp.stack(b1s)
    W2 = jnp.stack(W2s); b2 = jnp.stack(b2s)
    W3 = jnp.stack(W3s); b3 = jnp.stack(b3s)

    # Predict layers in branch-major row layout: rows [b*s_tile, (b+1)*s_tile)
    # all hold predict_b's weight vector / bias (pre-broadcast at pack time).
    wp_rows, bp_rows = [], []
    for (Wj, bj) in params["predict"]:
        wrow = jnp.zeros((HID_PAD,), jnp.float32).at[:HID].set(Wj[0])
        wp_rows.append(jnp.broadcast_to(wrow, (s_tile, HID_PAD)))
        bp_rows.append(jnp.full((s_tile, 1), bj[0], jnp.float32))
    Wp = jnp.concatenate(wp_rows, axis=0)      # (3*s_tile, 128)
    bp = jnp.concatenate(bp_rows, axis=0)      # (3*s_tile, 1)
    return (W1, b1, W2, b2, W3, b3, Wp, bp)


# ----------------------------------------------------------------------------
# JAX glue (jitted with the forward): fold the scalar physics algebra into
# per-sample constant coefficient matrices, batched over N samples.
# ----------------------------------------------------------------------------
def build_coeffs_batched(x, s_tile):
    n = x.shape[0]
    G01, G02, G10 = x[:, 1], x[:, 2], x[:, 3]
    G12, G20, G21 = x[:, 5], x[:, 6], x[:, 7]
    w = x[:, 9:12]                              # (n, 3)
    pbar = x[:, 15:18]                          # (n, 3)
    alpha = x[:, 18:27].reshape(-1, 3, 3)       # (n, 3, 3)
    res = jnp.einsum('nk,nkj->nj', w, alpha)    # res[:, j] = w . alpha[:, j]

    c0,  c1,  c2  = res[:, 0] / (w[:, 1] * G10), res[:, 1] / (w[:, 0] * G01), res[:, 2] / (w[:, 0] * G02)
    c0p, c1p, c2p = res[:, 0] / (w[:, 2] * G20), res[:, 1] / (w[:, 2] * G21), res[:, 2] / (w[:, 1] * G12)
    z = jnp.zeros_like(c0)

    def rows(a, b, c):                          # branches as rows -> (n, 3)
        return jnp.stack([a, b, c], axis=1)

    z3 = rows(z, z, z)
    # Columns 0..7 of each (3, 8) coefficient matrix (cols 6,7 are padding).
    B0 = jnp.stack([z3, z3, z3, rows(c0p * G20, c1p * G20, c2p * G10),
                    z3, z3, z3, z3], axis=2)
    B1 = jnp.stack([rows(c0 * G01, c1 * G01, c2 * G01), z3, z3, z3,
                    rows(c0p * G21, c1p * G21, z), z3, z3, z3], axis=2)
    B2 = jnp.stack([z3, rows(c0 * G02, c1 * G02, c2 * G02), z3, z3,
                    rows(z, z, c2p * G12), z3, z3, z3], axis=2)
    Bc = jnp.stack([z3, z3, rows(c0, c1, c2) * 0.05, z3, z3,
                    rows(c0p, c1p, c2p) * 0.05, z3, z3], axis=2)
    B = jnp.stack([B0, B1, B2, Bc], axis=1)     # (n, 4, 3, 8)

    # Pad to a multiple of s_tile (padded samples get B=0, pbar=0 -> output 0)
    # then reorganize into branch-major per-tile blocks.
    n_pad = ((n + s_tile - 1) // s_tile) * s_tile
    t = n_pad // s_tile
    B = jnp.pad(B, ((0, n_pad - n), (0, 0), (0, 0), (0, 0)))
    pbar_p = jnp.pad(pbar, ((0, n_pad - n), (0, 0)))
    B_tiles = (B.reshape(t, s_tile, 4, 3, 8)
                 .transpose(0, 2, 3, 1, 4)
                 .reshape(t, 4, 3 * s_tile, 8))
    pbar_tiles = (pbar_p.reshape(t, s_tile, 3)
                         .transpose(0, 2, 1)
                         .reshape(t, 3 * s_tile, 1))
    return B_tiles, pbar_tiles


def mlp_pregression_pallas(x, packed, *, s_tile=8):
    """Batched forward: x is (N, 27); returns (N, 3) = [p0, p1, p2] per row."""
    assert s_tile % 8 == 0, "s_tile must be a multiple of 8 (sublane alignment)"
    n = x.shape[0]
    B_tiles, pbar_tiles = build_coeffs_batched(x.astype(jnp.float32), s_tile)
    out = run_kernel(B_tiles, pbar_tiles, packed)         # (T, 3*s_tile, 1)
    t = out.shape[0]
    out = out.reshape(t, 3, s_tile).transpose(0, 2, 1).reshape(t * s_tile, 3)
    return out[:n]


# ----------------------------------------------------------------------------
# Pure-JAX per-sample reference (mirrors the PyTorch forward exactly).
# ----------------------------------------------------------------------------
def mlp_pregression_ref_row(xr, params):
    G01, G02, G10, G12, G20, G21 = xr[1], xr[2], xr[3], xr[5], xr[6], xr[7]
    w = xr[9:12]
    pbar = xr[15:18]
    alpha = xr[18:27].reshape(3, 3)
    res = jnp.stack([jnp.dot(w, alpha[:, j]) for j in range(3)])
    p0, p1, p2 = pbar[0], pbar[1], pbar[2]
    c05 = jnp.asarray(0.05, xr.dtype)

    def lin(h, Wb):
        W, b = Wb
        return h @ W.T + b

    def mlp(feat, hp, pp):
        h = jax.nn.relu(lin(feat, hp[0]))
        h = jax.nn.relu(lin(h, hp[1]))
        h = jax.nn.relu(lin(h, hp[2]))
        return jax.nn.sigmoid(lin(h, pp))

    for k in range(3):
        GP0 = jnp.stack([G01 * p1, G02 * p2, c05])[None, :]
        GP1 = jnp.stack([G10 * p0, G12 * p2, c05])[None, :]
        GP2 = jnp.stack([G20 * p0, G21 * p1, c05])[None, :]
        feat0 = jnp.concatenate([res[0] / (w[1] * G10) * GP0,
                                 res[0] / (w[2] * G20) * GP2], 1)
        feat1 = jnp.concatenate([res[1] / (w[0] * G01) * GP0,
                                 res[1] / (w[2] * G21) * GP2], 1)
        feat2 = jnp.concatenate([res[2] / (w[0] * G02) * GP0,
                                 res[2] / (w[1] * G12) * GP1], 1)
        hp = params["hidden"][k]
        p0 = mlp(feat0, hp, params["predict"][0])[0, 0] * pbar[0]
        p1 = mlp(feat1, hp, params["predict"][1])[0, 0] * pbar[1]
        p2 = mlp(feat2, hp, params["predict"][2])[0, 0] * pbar[2]
    return jnp.stack([p0, p1, p2])


if __name__ == "__main__":
    key = jax.random.PRNGKey(0)
    k_x, k_p = jax.random.split(key)

    N = 16          # batch of independent (1, 27) samples
    S_TILE = 8      # samples per grid step -> (3*S_TILE, .) row blocks, grid=(2,)

    # (N, 27) feature rows; keep values away from zero (the physics glue
    # divides by w*G terms, exactly as the PyTorch reference would).
    x = jax.random.uniform(k_x, (N, 27), jnp.float32, minval=0.2, maxval=1.0)

    params = init_params(k_p)
    packed = pack_params(params, S_TILE)   # hoisted: packed ONCE, reused per call

    fwd = jax.jit(functools.partial(mlp_pregression_pallas, s_tile=S_TILE))
    out = jax.block_until_ready(fwd(x, packed))

    ref = jax.vmap(lambda row: mlp_pregression_ref_row(row, params))(x)
    assert out.shape == (N, 3)
    assert jnp.allclose(out, ref, rtol=5e-4, atol=1e-5), (out, ref)

    # NOTE: d0/d1/d2 and sigma0-2 in the torch forward are dead code (never
    # used in the returned value) and are intentionally not computed here.
    print("KERNEL_OK")
</pallas_src>

<mosaic_0001>
module attributes {stable_mosaic.version = 11 : i64} {
  func.func @_mlp_iterative_kernel(%arg0: i32, %arg1: memref<1x4x24x8xf32, #tpu.memory_space<vmem>>, %arg2: memref<1x24x1xf32, #tpu.memory_space<vmem>>, %arg3: memref<3x8x128xf32, #tpu.memory_space<vmem>>, %arg4: memref<3x1x128xf32, #tpu.memory_space<vmem>>, %arg5: memref<3x128x128xf32, #tpu.memory_space<vmem>>, %arg6: memref<3x1x128xf32, #tpu.memory_space<vmem>>, %arg7: memref<3x128x128xf32, #tpu.memory_space<vmem>>, %arg8: memref<3x1x128xf32, #tpu.memory_space<vmem>>, %arg9: memref<24x128xf32, #tpu.memory_space<vmem>>, %arg10: memref<24x1xf32, #tpu.memory_space<vmem>>, %arg11: memref<1x24x1xf32, #tpu.memory_space<vmem>>) attributes {dimension_semantics = [#tpu.dimension_semantics<parallel>], iteration_bounds = array<i64: 2>, scalar_prefetch = 0 : i64, scratch_operands = 0 : i64, tpu.core_type = #tpu.core_type<tc>, window_params = [{transform_indices = @transform_0, window_bounds = array<i64: 1, 4, 24, 8>}, {transform_indices = @transform_1, window_bounds = array<i64: 1, 24, 1>}, {pipeline_mode = #tpu.pipeline_mode<synchronous>, transform_indices = @transform_2, window_bounds = array<i64: 3, 8, 128>}, {pipeline_mode = #tpu.pipeline_mode<synchronous>, transform_indices = @transform_3, window_bounds = array<i64: 3, 1, 128>}, {pipeline_mode = #tpu.pipeline_mode<synchronous>, transform_indices = @transform_4, window_bounds = array<i64: 3, 128, 128>}, {pipeline_mode = #tpu.pipeline_mode<synchronous>, transform_indices = @transform_5, window_bounds = array<i64: 3, 1, 128>}, {pipeline_mode = #tpu.pipeline_mode<synchronous>, transform_indices = @transform_6, window_bounds = array<i64: 3, 128, 128>}, {pipeline_mode = #tpu.pipeline_mode<synchronous>, transform_indices = @transform_7, window_bounds = array<i64: 3, 1, 128>}, {pipeline_mode = #tpu.pipeline_mode<synchronous>, transform_indices = @transform_8, window_bounds = array<i64: 24, 128>}, {pipeline_mode = #tpu.pipeline_mode<synchronous>, transform_indices = @transform_9, window_bounds = array<i64: 24, 1>}, {transform_indices = @transform_10, window_bounds = array<i64: 1, 24, 1>}]} {
    %c0 = arith.constant 0 : index
    %c0_0 = arith.constant 0 : index
    %c0_1 = arith.constant 0 : index
    %c0_2 = arith.constant 0 : index
    %0 = vector.load %arg1[%c0, %c0_0, %c0_1, %c0_2] : memref<1x4x24x8xf32, #tpu.memory_space<vmem>>, vector<1x4x24x8xf32>
    %1 = vector.shape_cast %0 : vector<1x4x24x8xf32> to vector<4x24x8xf32>
    %2 = vector.extract_strided_slice %1 {offsets = [0, 0, 0], sizes = [1, 24, 8], strides = [1, 1, 1]} : vector<4x24x8xf32> to vector<1x24x8xf32>
    %3 = vector.shape_cast %2 : vector<1x24x8xf32> to vector<24x8xf32>
    %4 = vector.extract_strided_slice %1 {offsets = [1, 0, 0], sizes = [1, 24, 8], strides = [1, 1, 1]} : vector<4x24x8xf32> to vector<1x24x8xf32>
    %5 = vector.shape_cast %4 : vector<1x24x8xf32> to vector<24x8xf32>
    %6 = vector.extract_strided_slice %1 {offsets = [2, 0, 0], sizes = [1, 24, 8], strides = [1, 1, 1]} : vector<4x24x8xf32> to vector<1x24x8xf32>
    %7 = vector.shape_cast %6 : vector<1x24x8xf32> to vector<24x8xf32>
    %8 = vector.extract_strided_slice %1 {offsets = [3, 0, 0], sizes = [1, 24, 8], strides = [1, 1, 1]} : vector<4x24x8xf32> to vector<1x24x8xf32>
    %9 = vector.shape_cast %8 : vector<1x24x8xf32> to vector<24x8xf32>
    %c0_3 = arith.constant 0 : index
    %c0_4 = arith.constant 0 : index
    %c0_5 = arith.constant 0 : index
    %10 = vector.load %arg2[%c0_3, %c0_4, %c0_5] : memref<1x24x1xf32, #tpu.memory_space<vmem>>, vector<1x24x1xf32>
    %11 = vector.shape_cast %10 : vector<1x24x1xf32> to vector<24x1xf32>
    %c0_6 = arith.constant 0 : index
    %c0_7 = arith.constant 0 : index
    %12 = vector.load %arg9[%c0_6, %c0_7] : memref<24x128xf32, #tpu.memory_space<vmem>>, vector<24x128xf32>
    %c0_8 = arith.constant 0 : index
    %c0_9 = arith.constant 0 : index
    %13 = vector.load %arg10[%c0_8, %c0_9] : memref<24x1xf32, #tpu.memory_space<vmem>>, vector<24x1xf32>
    %14 = vector.extract_strided_slice %11 {offsets = [0, 0], sizes = [8, 1], strides = [1, 1]} : vector<24x1xf32> to vector<8x1xf32>
    %15 = vector.extract_strided_slice %11 {offsets = [8, 0], sizes = [8, 1], strides = [1, 1]} : vector<24x1xf32> to vector<8x1xf32>
    %16 = vector.extract_strided_slice %11 {offsets = [16, 0], sizes = [8, 1], strides = [1, 1]} : vector<24x1xf32> to vector<8x1xf32>
    %17 = tpu.concatenate %14, %14, %14 in 0 : vector<8x1xf32>, vector<8x1xf32>, vector<8x1xf32> -> vector<24x1xf32>
    %18 = tpu.concatenate %15, %15, %15 in 0 : vector<8x1xf32>, vector<8x1xf32>, vector<8x1xf32> -> vector<24x1xf32>
    %19 = tpu.concatenate %16, %16, %16 in 0 : vector<8x1xf32>, vector<8x1xf32>, vector<8x1xf32> -> vector<24x1xf32>
    %20 = vector.broadcast %17 : vector<24x1xf32> to vector<24x8xf32>
    %21 = arith.mulf %20, %3 : vector<24x8xf32>
    %22 = vector.broadcast %18 : vector<24x1xf32> to vector<24x8xf32>
    %23 = arith.mulf %22, %5 : vector<24x8xf32>
    %24 = arith.addf %21, %23 : vector<24x8xf32>
    %25 = vector.broadcast %19 : vector<24x1xf32> to vector<24x8xf32>
    %26 = arith.mulf %25, %7 : vector<24x8xf32>
    %27 = arith.addf %24, %26 : vector<24x8xf32>
    %28 = arith.addf %27, %9 : vector<24x8xf32>
    %c0_10 = arith.constant 0 : index
    %c0_11 = arith.constant 0 : index
    %c0_12 = arith.constant 0 : index
    %29 = vector.load %arg3[%c0_10, %c0_11, %c0_12] : memref<3x8x128xf32, #tpu.memory_space<vmem>>, vector<1x8x128xf32>
    %30 = vector.shape_cast %29 : vector<1x8x128xf32> to vector<8x128xf32>
    %cst = arith.constant dense<0.000000e+00> : vector<24x128xf32>
    %31 = tpu.matmul %28, %30, %cst {dimension_numbers = #tpu.dot_dimension_numbers<[1], [0], [0], [1], [0, 0, 1, 1], [], []>} : vector<24x8xf32>, vector<8x128xf32>, vector<24x128xf32> -> vector<24x128xf32>
    %c0_13 = arith.constant 0 : index
    %c0_14 = arith.constant 0 : index
    %c0_15 = arith.constant 0 : index
    %32 = vector.load %arg4[%c0_13, %c0_14, %c0_15] : memref<3x1x128xf32, #tpu.memory_space<vmem>>, vector<1x1x128xf32>
    %33 = vector.shape_cast %32 : vector<1x1x128xf32> to vector<1x128xf32>
    %34 = vector.broadcast %33 : vector<1x128xf32> to vector<24x128xf32>
    %35 = arith.addf %31, %34 : vector<24x128xf32>
    %cst_16 = arith.constant 0.000000e+00 : f32
    %36 = vector.broadcast %cst_16 : f32 to vector<24x128xf32>
    %37 = arith.maximumf %35, %36 : vector<24x128xf32>
    %c0_17 = arith.constant 0 : index
    %c0_18 = arith.constant 0 : index
    %c0_19 = arith.constant 0 : index
    %38 = vector.load %arg5[%c0_17, %c0_18, %c0_19] : memref<3x128x128xf32, #tpu.memory_space<vmem>>, vector<1x128x128xf32>
    %39 = vector.shape_cast %38 : vector<1x128x128xf32> to vector<128x128xf32>
    %cst_20 = arith.constant dense<0.000000e+00> : vector<24x128xf32>
    %40 = tpu.matmul %37, %39, %cst_20 {dimension_numbers = #tpu.dot_dimension_numbers<[1], [0], [0], [1], [0, 0, 1, 1], [], []>} : vector<24x128xf32>, vector<128x128xf32>, vector<24x128xf32> -> vector<24x128xf32>
    %c0_21 = arith.constant 0 : index
    %c0_22 = arith.constant 0 : index
    %c0_23 = arith.constant 0 : index
    %41 = vector.load %arg6[%c0_21, %c0_22, %c0_23] : memref<3x1x128xf32, #tpu.memory_space<vmem>>, vector<1x1x128xf32>
    %42 = vector.shape_cast %41 : vector<1x1x128xf32> to vector<1x128xf32>
    %43 = vector.broadcast %42 : vector<1x128xf32> to vector<24x128xf32>
    %44 = arith.addf %40, %43 : vector<24x128xf32>
    %cst_24 = arith.constant 0.000000e+00 : f32
    %45 = vector.broadcast %cst_24 : f32 to vector<24x128xf32>
    %46 = arith.maximumf %44, %45 : vector<24x128xf32>
    %c0_25 = arith.constant 0 : index
    %c0_26 = arith.constant 0 : index
    %c0_27 = arith.constant 0 : index
    %47 = vector.load %arg7[%c0_25, %c0_26, %c0_27] : memref<3x128x128xf32, #tpu.memory_space<vmem>>, vector<1x128x128xf32>
    %48 = vector.shape_cast %47 : vector<1x128x128xf32> to vector<128x128xf32>
    %cst_28 = arith.constant dense<0.000000e+00> : vector<24x128xf32>
    %49 = tpu.matmul %46, %48, %cst_28 {dimension_numbers = #tpu.dot_dimension_numbers<[1], [0], [0], [1], [0, 0, 1, 1], [], []>} : vector<24x128xf32>, vector<128x128xf32>, vector<24x128xf32> -> vector<24x128xf32>
    %c0_29 = arith.constant 0 : index
    %c0_30 = arith.constant 0 : index
    %c0_31 = arith.constant 0 : index
    %50 = vector.load %arg8[%c0_29, %c0_30, %c0_31] : memref<3x1x128xf32, #tpu.memory_space<vmem>>, vector<1x1x128xf32>
    %51 = vector.shape_cast %50 : vector<1x1x128xf32> to vector<1x128xf32>
    %52 = vector.broadcast %51 : vector<1x128xf32> to vector<24x128xf32>
    %53 = arith.addf %49, %52 : vector<24x128xf32>
    %cst_32 = arith.constant 0.000000e+00 : f32
    %54 = vector.broadcast %cst_32 : f32 to vector<24x128xf32>
    %55 = arith.maximumf %53, %54 : vector<24x128xf32>
    %56 = arith.mulf %55, %12 : vector<24x128xf32>
    %cst_33 = arith.constant dense<0.000000e+00> : vector<24xf32>
    %57 = vector.multi_reduction <add>, %56, %cst_33 [1] : vector<24x128xf32> to vector<24xf32>
    %58 = vector.shape_cast %57 : vector<24xf32> to vector<24x1xf32>
    %59 = arith.addf %58, %13 : vector<24x1xf32>
    %60 = arith.negf %59 : vector<24x1xf32>
    %61 = math.exp %60 : vector<24x1xf32>
    %cst_34 = arith.constant 1.000000e+00 : f32
    %62 = vector.broadcast %cst_34 : f32 to vector<24x1xf32>
    %63 = arith.addf %62, %61 : vector<24x1xf32>
    %64 = arith.divf %62, %63 : vector<24x1xf32>
    %65 = arith.mulf %64, %11 : vector<24x1xf32>
    %66 = vector.extract_strided_slice %65 {offsets = [0, 0], sizes = [8, 1], strides = [1, 1]} : vector<24x1xf32> to vector<8x1xf32>
    %67 = vector.extract_strided_slice %65 {offsets = [8, 0], sizes = [8, 1], strides = [1, 1]} : vector<24x1xf32> to vector<8x1xf32>
    %68 = vector.extract_strided_slice %65 {offsets = [16, 0], sizes = [8, 1], strides = [1, 1]} : vector<24x1xf32> to vector<8x1xf32>
    %69 = tpu.concatenate %66, %66, %66 in 0 : vector<8x1xf32>, vector<8x1xf32>, vector<8x1xf32> -> vector<24x1xf32>
    %70 = tpu.concatenate %67, %67, %67 in 0 : vector<8x1xf32>, vector<8x1xf32>, vector<8x1xf32> -> vector<24x1xf32>
    %71 = tpu.concatenate %68, %68, %68 in 0 : vector<8x1xf32>, vector<8x1xf32>, vector<8x1xf32> -> vector<24x1xf32>
    %72 = vector.broadcast %69 : vector<24x1xf32> to vector<24x8xf32>
    %73 = arith.mulf %72, %3 : vector<24x8xf32>
    %74 = vector.broadcast %70 : vector<24x1xf32> to vector<24x8xf32>
    %75 = arith.mulf %74, %5 : vector<24x8xf32>
    %76 = arith.addf %73, %75 : vector<24x8xf32>
    %77 = vector.broadcast %71 : vector<24x1xf32> to vector<24x8xf32>
    %78 = arith.mulf %77, %7 : vector<24x8xf32>
    %79 = arith.addf %76, %78 : vector<24x8xf32>
    %80 = arith.addf %79, %9 : vector<24x8xf32>
    %c1 = arith.constant 1 : index
    %c0_35 = arith.constant 0 : index
    %c0_36 = arith.constant 0 : index
    %81 = vector.load %arg3[%c1, %c0_35, %c0_36] : memref<3x8x128xf32, #tpu.memory_space<vmem>>, vector<1x8x128xf32>
    %82 = vector.shape_cast %81 : vector<1x8x128xf32> to vector<8x128xf32>
    %cst_37 = arith.constant dense<0.000000e+00> : vector<24x128xf32>
    %83 = tpu.matmul %80, %82, %cst_37 {dimension_numbers = #tpu.dot_dimension_numbers<[1], [0], [0], [1], [0, 0, 1, 1], [], []>} : vector<24x8xf32>, vector<8x128xf32>, vector<24x128xf32> -> vector<24x128xf32>
    %c1_38 = arith.constant 1 : index
    %c0_39 = arith.constant 0 : index
    %c0_40 = arith.constant 0 : index
    %84 = vector.load %arg4[%c1_38, %c0_39, %c0_40] : memref<3x1x128xf32, #tpu.memory_space<vmem>>, vector<1x1x128xf32>
    %85 = vector.shape_cast %84 : vector<1x1x128xf32> to vector<1x128xf32>
    %86 = vector.broadcast %85 : vector<1x128xf32> to vector<24x128xf32>
    %87 = arith.addf %83, %86 : vector<24x128xf32>
    %cst_41 = arith.constant 0.000000e+00 : f32
    %88 = vector.broadcast %cst_41 : f32 to vector<24x128xf32>
    %89 = arith.maximumf %87, %88 : vector<24x128xf32>
    %c1_42 = arith.constant 1 : index
    %c0_43 = arith.constant 0 : index
    %c0_44 = arith.constant 0 : index
    %90 = vector.load %arg5[%c1_42, %c0_43, %c0_44] : memref<3x128x128xf32, #tpu.memory_space<vmem>>, vector<1x128x128xf32>
    %91 = vector.shape_cast %90 : vector<1x128x128xf32> to vector<128x128xf32>
    %cst_45 = arith.constant dense<0.000000e+00> : vector<24x128xf32>
    %92 = tpu.matmul %89, %91, %cst_45 {dimension_numbers = #tpu.dot_dimension_numbers<[1], [0], [0], [1], [0, 0, 1, 1], [], []>} : vector<24x128xf32>, vector<128x128xf32>, vector<24x128xf32> -> vector<24x128xf32>
    %c1_46 = arith.constant 1 : index
    %c0_47 = arith.constant 0 : index
    %c0_48 = arith.constant 0 : index
    %93 = vector.load %arg6[%c1_46, %c0_47, %c0_48] : memref<3x1x128xf32, #tpu.memory_space<vmem>>, vector<1x1x128xf32>
    %94 = vector.shape_cast %93 : vector<1x1x128xf32> to vector<1x128xf32>
    %95 = vector.broadcast %94 : vector<1x128xf32> to vector<24x128xf32>
    %96 = arith.addf %92, %95 : vector<24x128xf32>
    %cst_49 = arith.constant 0.000000e+00 : f32
    %97 = vector.broadcast %cst_49 : f32 to vector<24x128xf32>
    %98 = arith.maximumf %96, %97 : vector<24x128xf32>
    %c1_50 = arith.constant 1 : index
    %c0_51 = arith.constant 0 : index
    %c0_52 = arith.constant 0 : index
    %99 = vector.load %arg7[%c1_50, %c0_51, %c0_52] : memref<3x128x128xf32, #tpu.memory_space<vmem>>, vector<1x128x128xf32>
    %100 = vector.shape_cast %99 : vector<1x128x128xf32> to vector<128x128xf32>
    %cst_53 = arith.constant dense<0.000000e+00> : vector<24x128xf32>
    %101 = tpu.matmul %98, %100, %cst_53 {dimension_numbers = #tpu.dot_dimension_numbers<[1], [0], [0], [1], [0, 0, 1, 1], [], []>} : vector<24x128xf32>, vector<128x128xf32>, vector<24x128xf32> -> vector<24x128xf32>
    %c1_54 = arith.constant 1 : index
    %c0_55 = arith.constant 0 : index
    %c0_56 = arith.constant 0 : index
    %102 = vector.load %arg8[%c1_54, %c0_55, %c0_56] : memref<3x1x128xf32, #tpu.memory_space<vmem>>, vector<1x1x128xf32>
    %103 = vector.shape_cast %102 : vector<1x1x128xf32> to vector<1x128xf32>
    %104 = vector.broadcast %103 : vector<1x128xf32> to vector<24x128xf32>
    %105 = arith.addf %101, %104 : vector<24x128xf32>
    %cst_57 = arith.constant 0.000000e+00 : f32
    %106 = vector.broadcast %cst_57 : f32 to vector<24x128xf32>
    %107 = arith.maximumf %105, %106 : vector<24x128xf32>
    %108 = arith.mulf %107, %12 : vector<24x128xf32>
    %cst_58 = arith.constant dense<0.000000e+00> : vector<24xf32>
    %109 = vector.multi_reduction <add>, %108, %cst_58 [1] : vector<24x128xf32> to vector<24xf32>
    %110 = vector.shape_cast %109 : vector<24xf32> to vector<24x1xf32>
    %111 = arith.addf %110, %13 : vector<24x1xf32>
    %112 = arith.negf %111 : vector<24x1xf32>
    %113 = math.exp %112 : vector<24x1xf32>
    %cst_59 = arith.constant 1.000000e+00 : f32
    %114 = vector.broadcast %cst_59 : f32 to vector<24x1xf32>
    %115 = arith.addf %114, %113 : vector<24x1xf32>
    %116 = arith.divf %114, %115 : vector<24x1xf32>
    %117 = arith.mulf %116, %11 : vector<24x1xf32>
    %118 = vector.extract_strided_slice %117 {offsets = [0, 0], sizes = [8, 1], strides = [1, 1]} : vector<24x1xf32> to vector<8x1xf32>
    %119 = vector.extract_strided_slice %117 {offsets = [8, 0], sizes = [8, 1], strides = [1, 1]} : vector<24x1xf32> to vector<8x1xf32>
    %120 = vector.extract_strided_slice %117 {offsets = [16, 0], sizes = [8, 1], strides = [1, 1]} : vector<24x1xf32> to vector<8x1xf32>
    %121 = tpu.concatenate %118, %118, %118 in 0 : vector<8x1xf32>, vector<8x1xf32>, vector<8x1xf32> -> vector<24x1xf32>
    %122 = tpu.concatenate %119, %119, %119 in 0 : vector<8x1xf32>, vector<8x1xf32>, vector<8x1xf32> -> vector<24x1xf32>
    %123 = tpu.concatenate %120, %120, %120 in 0 : vector<8x1xf32>, vector<8x1xf32>, vector<8x1xf32> -> vector<24x1xf32>
    %124 = vector.broadcast %121 : vector<24x1xf32> to vector<24x8xf32>
    %125 = arith.mulf %124, %3 : vector<24x8xf32>
    %126 = vector.broadcast %122 : vector<24x1xf32> to vector<24x8xf32>
    %127 = arith.mulf %126, %5 : vector<24x8xf32>
    %128 = arith.addf %125, %127 : vector<24x8xf32>
    %129 = vector.broadcast %123 : vector<24x1xf32> to vector<24x8xf32>
    %130 = arith.mulf %129, %7 : vector<24x8xf32>
    %131 = arith.addf %128, %130 : vector<24x8xf32>
    %132 = arith.addf %131, %9 : vector<24x8xf32>
    %c2 = arith.constant 2 : index
    %c0_60 = arith.constant 0 : index
    %c0_61 = arith.constant 0 : index
    %133 = vector.load %arg3[%c2, %c0_60, %c0_61] : memref<3x8x128xf32, #tpu.memory_space<vmem>>, vector<1x8x128xf32>
    %134 = vector.shape_cast %133 : vector<1x8x128xf32> to vector<8x128xf32>
    %cst_62 = arith.constant dense<0.000000e+00> : vector<24x128xf32>
    %135 = tpu.matmul %132, %134, %cst_62 {dimension_numbers = #tpu.dot_dimension_numbers<[1], [0], [0], [1], [0, 0, 1, 1], [], []>} : vector<24x8xf32>, vector<8x128xf32>, vector<24x128xf32> -> vector<24x128xf32>
    %c2_63 = arith.constant 2 : index
    %c0_64 = arith.constant 0 : index
    %c0_65 = arith.constant 0 : index
    %136 = vector.load %arg4[%c2_63, %c0_64, %c0_65] : memref<3x1x128xf32, #tpu.memory_space<vmem>>, vector<1x1x128xf32>
    %137 = vector.shape_cast %136 : vector<1x1x128xf32> to vector<1x128xf32>
    %138 = vector.broadcast %137 : vector<1x128xf32> to vector<24x128xf32>
    %139 = arith.addf %135, %138 : vector<24x128xf32>
    %cst_66 = arith.constant 0.000000e+00 : f32
    %140 = vector.broadcast %cst_66 : f32 to vector<24x128xf32>
    %141 = arith.maximumf %139, %140 : vector<24x128xf32>
    %c2_67 = arith.constant 2 : index
    %c0_68 = arith.constant 0 : index
    %c0_69 = arith.constant 0 : index
    %142 = vector.load %arg5[%c2_67, %c0_68, %c0_69] : memref<3x128x128xf32, #tpu.memory_space<vmem>>, vector<1x128x128xf32>
    %143 = vector.shape_cast %142 : vector<1x128x128xf32> to vector<128x128xf32>
    %cst_70 = arith.constant dense<0.000000e+00> : vector<24x128xf32>
    %144 = tpu.matmul %141, %143, %cst_70 {dimension_numbers = #tpu.dot_dimension_numbers<[1], [0], [0], [1], [0, 0, 1, 1], [], []>} : vector<24x128xf32>, vector<128x128xf32>, vector<24x128xf32> -> vector<24x128xf32>
    %c2_71 = arith.constant 2 : index
    %c0_72 = arith.constant 0 : index
    %c0_73 = arith.constant 0 : index
    %145 = vector.load %arg6[%c2_71, %c0_72, %c0_73] : memref<3x1x128xf32, #tpu.memory_space<vmem>>, vector<1x1x128xf32>
    %146 = vector.shape_cast %145 : vector<1x1x128xf32> to vector<1x128xf32>
    %147 = vector.broadcast %146 : vector<1x128xf32> to vector<24x128xf32>
    %148 = arith.addf %144, %147 : vector<24x128xf32>
    %cst_74 = arith.constant 0.000000e+00 : f32
    %149 = vector.broadcast %cst_74 : f32 to vector<24x128xf32>
    %150 = arith.maximumf %148, %149 : vector<24x128xf32>
    %c2_75 = arith.constant 2 : index
    %c0_76 = arith.constant 0 : index
    %c0_77 = arith.constant 0 : index
    %151 = vector.load %arg7[%c2_75, %c0_76, %c0_77] : memref<3x128x128xf32, #tpu.memory_space<vmem>>, vector<1x128x128xf32>
    %152 = vector.shape_cast %151 : vector<1x128x128xf32> to vector<128x128xf32>
    %cst_78 = arith.constant dense<0.000000e+00> : vector<24x128xf32>
    %153 = tpu.matmul %150, %152, %cst_78 {dimension_numbers = #tpu.dot_dimension_numbers<[1], [0], [0], [1], [0, 0, 1, 1], [], []>} : vector<24x128xf32>, vector<128x128xf32>, vector<24x128xf32> -> vector<24x128xf32>
    %c2_79 = arith.constant 2 : index
    %c0_80 = arith.constant 0 : index
    %c0_81 = arith.constant 0 : index
    %154 = vector.load %arg8[%c2_79, %c0_80, %c0_81] : memref<3x1x128xf32, #tpu.memory_space<vmem>>, vector<1x1x128xf32>
    %155 = vector.shape_cast %154 : vector<1x1x128xf32> to vector<1x128xf32>
    %156 = vector.broadcast %155 : vector<1x128xf32> to vector<24x128xf32>
    %157 = arith.addf %153, %156 : vector<24x128xf32>
    %cst_82 = arith.constant 0.000000e+00 : f32
    %158 = vector.broadcast %cst_82 : f32 to vector<24x128xf32>
    %159 = arith.maximumf %157, %158 : vector<24x128xf32>
    %160 = arith.mulf %159, %12 : vector<24x128xf32>
    %cst_83 = arith.constant dense<0.000000e+00> : vector<24xf32>
    %161 = vector.multi_reduction <add>, %160, %cst_83 [1] : vector<24x128xf32> to vector<24xf32>
    %162 = vector.shape_cast %161 : vector<24xf32> to vector<24x1xf32>
    %163 = arith.addf %162, %13 : vector<24x1xf32>
    %164 = arith.negf %163 : vector<24x1xf32>
    %165 = math.exp %164 : vector<24x1xf32>
    %cst_84 = arith.constant 1.000000e+00 : f32
    %166 = vector.broadcast %cst_84 : f32 to vector<24x1xf32>
    %167 = arith.addf %166, %165 : vector<24x1xf32>
    %168 = arith.divf %166, %167 : vector<24x1xf32>
    %169 = arith.mulf %168, %11 : vector<24x1xf32>
    %c0_85 = arith.constant 0 : index
    %c0_86 = arith.constant 0 : index
    %c0_87 = arith.constant 0 : index
    %170 = vector.load %arg11[%c0_85, %c0_86, %c0_87] : memref<1x24x1xf32, #tpu.memory_space<vmem>>, vector<1x24x1xf32>
    %171 = vector.shape_cast %170 : vector<1x24x1xf32> to vector<24x1xf32>
    %172 = vector.shape_cast %169 : vector<24x1xf32> to vector<1x24x1xf32>
    tpu.vector_store %arg11[%c0_85, %c0_86, %c0_87], %172 {strides = array<i32>} : memref<1x24x1xf32, #tpu.memory_space<vmem>>, vector<1x24x1xf32>,
    return
  }
  func.func @transform_0(%arg0: i32) -> (i32, i32, i32, i32) {
    %c0_i32 = arith.constant 0 : i32
    %c0_i32_0 = arith.constant 0 : i32
    %c0_i32_1 = arith.constant 0 : i32
    %c0_i32_2 = arith.constant 0 : i32
    return %arg0, %c0_i32, %c0_i32_0, %c0_i32_1 : i32, i32, i32, i32
  }
  func.func @transform_1(%arg0: i32) -> (i32, i32, i32) {
    %c0_i32 = arith.constant 0 : i32
    %c0_i32_0 = arith.constant 0 : i32
    %c0_i32_1 = arith.constant 0 : i32
    return %arg0, %c0_i32, %c0_i32_0 : i32, i32, i32
  }
  func.func @transform_2(%arg0: i32) -> (i32, i32, i32) {
    %c0_i32 = arith.constant 0 : i32
    %c0_i32_0 = arith.constant 0 : i32
    %c0_i32_1 = arith.constant 0 : i32
    %c0_i32_2 = arith.constant 0 : i32
    return %c0_i32, %c0_i32_0, %c0_i32_1 : i32, i32, i32
  }
  func.func @transform_3(%arg0: i32) -> (i32, i32, i32) {
    %c0_i32 = arith.constant 0 : i32
    %c0_i32_0 = arith.constant 0 : i32
    %c0_i32_1 = arith.constant 0 : i32
    %c0_i32_2 = arith.constant 0 : i32
    return %c0_i32, %c0_i32_0, %c0_i32_1 : i32, i32, i32
  }
  func.func @transform_4(%arg0: i32) -> (i32, i32, i32) {
    %c0_i32 = arith.constant 0 : i32
    %c0_i32_0 = arith.constant 0 : i32
    %c0_i32_1 = arith.constant 0 : i32
    %c0_i32_2 = arith.constant 0 : i32
    return %c0_i32, %c0_i32_0, %c0_i32_1 : i32, i32, i32
  }
  func.func @transform_5(%arg0: i32) -> (i32, i32, i32) {
    %c0_i32 = arith.constant 0 : i32
    %c0_i32_0 = arith.constant 0 : i32
    %c0_i32_1 = arith.constant 0 : i32
    %c0_i32_2 = arith.constant 0 : i32
    return %c0_i32, %c0_i32_0, %c0_i32_1 : i32, i32, i32
  }
  func.func @transform_6(%arg0: i32) -> (i32, i32, i32) {
    %c0_i32 = arith.constant 0 : i32
    %c0_i32_0 = arith.constant 0 : i32
    %c0_i32_1 = arith.constant 0 : i32
    %c0_i32_2 = arith.constant 0 : i32
    return %c0_i32, %c0_i32_0, %c0_i32_1 : i32, i32, i32
  }
  func.func @transform_7(%arg0: i32) -> (i32, i32, i32) {
    %c0_i32 = arith.constant 0 : i32
    %c0_i32_0 = arith.constant 0 : i32
    %c0_i32_1 = arith.constant 0 : i32
    %c0_i32_2 = arith.constant 0 : i32
    return %c0_i32, %c0_i32_0, %c0_i32_1 : i32, i32, i32
  }
  func.func @transform_8(%arg0: i32) -> (i32, i32) {
    %c0_i32 = arith.constant 0 : i32
    %c0_i32_0 = arith.constant 0 : i32
    %c0_i32_1 = arith.constant 0 : i32
    return %c0_i32, %c0_i32_0 : i32, i32
  }
  func.func @transform_9(%arg0: i32) -> (i32, i32) {
    %c0_i32 = arith.constant 0 : i32
    %c0_i32_0 = arith.constant 0 : i32
    %c0_i32_1 = arith.constant 0 : i32
    return %c0_i32, %c0_i32_0 : i32, i32
  }
  func.func @transform_10(%arg0: i32) -> (i32, i32, i32) {
    %c0_i32 = arith.constant 0 : i32
    %c0_i32_0 = arith.constant 0 : i32
    %c0_i32_1 = arith.constant 0 : i32
    return %arg0, %c0_i32, %c0_i32_0 : i32, i32, i32
  }
}

</mosaic_0001>

<bundles_post_ra>
// kernel: mlp_pregression_pallas.1
= control target key start
LH: loop header
LB: loop body
LE: loop exit
PB: predicated region body
PF: predicated region fallthrough
CT: control target
= control target key end

     0   :  { %s2253_s13 = smov 0   ;;  %s2912_s0 = inlined_call_operand.vmem [shape: f32[2,4,24,8], index: 0, kind: input, shape index: {}]   ;;  %s2913_s1 = inlined_call_operand.vmem [shape: f32[2,24,1], index: 1, kind: input, shape index: {}]   ;;  %s2914_s2 = inlined_call_operand.vmem [shape: f32[3,8,128], index: 2, kind: input, shape index: {}]   ;;  %s2915_s3 = inlined_call_operand.vmem [shape: f32[3,1,128], index: 3, kind: input, shape index: {}]   ;;  %s2916_s4 = inlined_call_operand.vmem [shape: f32[3,128,128], index: 4, kind: input, shape index: {}]   ;;  %s2917_s5 = inlined_call_operand.vmem [shape: f32[3,1,128], index: 5, kind: input, shape index: {}]   ;;  %s2918_s6 = inlined_call_operand.vmem [shape: f32[3,128,128], index: 6, kind: input, shape index: {}]   ;;  %s2919_s7 = inlined_call_operand.vmem [shape: f32[3,1,128], index: 7, kind: input, shape index: {}]   ;;  %s2920_s8 = inlined_call_operand.vmem [shape: f32[24,128], index: 8, kind: input, shape index: {}]   ;;  %s2921_s9 = inlined_call_operand.vmem [shape: f32[24,1], index: 9, kind: input, shape index: {}]   ;;  %s2922_s10 = inlined_call_operand.vmem [shape: f32[2,24,1], index: 10, kind: output, shape index: {}]  }
   0x1 LB: > { %s1619_s14 = sadd.s32 4294967295, %s2193_s13   ;;  %p1623_p0 = scmp.ge.s32.totalorder %s2193_s13, 1  ;;  %s2193_s13 = sphi %s2253_s13, %s20_s13  }
   0x2   : > { %p322_p1 = scmp.lt.s32.totalorder %s2193_s13, 3 }
   0x4   : > { %p323_p2 = pnand %p1623_p0, %p322_p1 }
   0x5   : > { %p365_p3 = scmp.lt.s32.totalorder (!%p323_p2), %s1619_s14, 1 }
   0x6   : > { %326 = sbr.rel (%p323_p2) target bundleno = 2738 (0xab2), region = 60 }
   0xb   : > { %v2195_v0 = vmov 0   ;;  %s2924_s14 = smov (!%p365_p3, %s1619_s14), 1  ;;  %v434_v4 = vld [vmem:[%s2914_s2] sm:$0xff]  ;;  %v2196_v5 = vmov 0.0   ;;  %vm2197_vm0 = vmmov 0   ;;  %v550_v6 = vld [vmem:[%s2916_s4 + $0x78] sm:$0xff] }
   0xc   : > { %2146 = vset.pattern.permute.xlu0 %v2195_v0  ;;  %2147 = vset.pattern.permute.xlu1 %v2195_v0  ;;  %s2134_s15 = smul.u32 24, %s2924_s14  ;;  %v549_v7 = vld [vmem:[%s2916_s4 + $0x70] sm:$0xff]  ;;  %v548_v8 = vld [vmem:[%s2916_s4 + $0x68] sm:$0xff]  ;;  %v547_v9 = vld [vmem:[%s2916_s4 + $0x60] sm:$0xff]  ;;  %vm442_vm1 = vcmask 64512   ;;  %vm1548_vm2 = vcmask 7168  }
   0xd   : > { %1854 = vmatprep.subr.mxu0 %v2196_v5  ;;  %1856 = vmatprep.mubr.msk.f32.mxu0 %vm2197_vm0, %v2196_v5  ;;  %v546_v10 = vld [vmem:[%s2916_s4 + $0x58] sm:$0xff]  ;;  %v545_v11 = vld [vmem:[%s2916_s4 + $0x50] sm:$0xff]  ;;  %v544_v12 = vld [vmem:[%s2916_s4 + $0x48] sm:$0xff]  ;;  %s2133_s11 = smul.u32 96, %s2924_s14 }
   0xe   : > { %s2269_s18 = scalar_lea.vmem %s2913_s1, %s2134_s15  ;;  %1855 = vmatpush3.msra.mxu0 %v434_v4  ;;  %1865 = vmatprep.subr.mxu1 %v2196_v5  ;;  %v543_v13 = vld [vmem:[%s2916_s4 + $0x40] sm:$0xff]  ;;  %v542_v14 = vld [vmem:[%s2916_s4 + $0x38] sm:$0xff]  ;;  %v541_v15 = vld [vmem:[%s2916_s4 + $0x30] sm:$0xff]  ;;  %s379_s29 = scalar_lea.vmem %s2922_s10, %s2134_s15 }
   0xf   : > { %v2272_v1 = vld [vmem:[%s2269_s18] sm:$0xff]  ;;  %v2275_v2 = vld [vmem:[%s2269_s18 + $0x10] sm:$0xff]  ;;  %v2280_v3 = vld [vmem:[%s2269_s18 + $0x8] sm:$0xff]  ;;  %1897 = vmatprep.mubr.msk.f32.mxu1 %vm2197_vm0, %v2196_v5  ;;  %1906 = vmatprep.subr.mxu0 %v2196_v5  ;;  %s2349_s17 = scalar_lea.vmem %s2912_s0, %s2133_s11 }
  0x10   : > { %403 = vperm.xlu0 %2146, %v2272_v1   ;;  %422 = vperm.xlu1 %2147, %v2275_v2   ;;  %v540_v16 = vld [vmem:[%s2916_s4 + $0x28] sm:$0xff]  ;;  %v539_v17 = vld [vmem:[%s2916_s4 + $0x20] sm:$0xff]  ;;  %v538_v18 = vld [vmem:[%s2916_s4 + $0x18] sm:$0xff] }
  0x11   : > { %1866 = vmatpush3.msra.mxu1 %v550_v6  ;;  %v2352_v20 = vld [vmem:[%s2349_s17] sm:$0xff]  ;;  %v2355_v21 = vld [vmem:[%s2349_s17 + $0x8] sm:$0xff]  ;;  %v2358_v22 = vld [vmem:[%s2349_s17 + $0x18] sm:$0xff] }
  0x12   : > { %1867 = vmatprep.subr.mxu1 %v2196_v5  ;;  %v2361_v23 = vld [vmem:[%s2349_s17 + $0x20] sm:$0xff]  ;;  %v2364_v25 = vld [vmem:[%s2349_s17 + $0x30] sm:$0xff]  ;;  %v2368_v28 = vld [vmem:[%s2349_s17 + $0x28] sm:$0xff] }
  0x13   : > { %1868 = vmatpush3.msra.mxu1 %v549_v7  ;;  %v2371_v29 = vld [vmem:[%s2349_s17 + $0x38] sm:$0xff]  ;;  %v2378_v34 = vld [vmem:[%s2349_s17 + $0x10] sm:$0xff]  ;;  %v2383_v39 = vld [vmem:[%s2349_s17 + $0x40] sm:$0xff] }
  0x14   : > { %411 = vperm.xlu0 %2146, %v2280_v3   ;;  %1869 = vmatprep.subr.mxu1 %v2196_v5  ;;  %v2386_v40 = vld [vmem:[%s2349_s17 + $0x48] sm:$0xff]  ;;  %v2392_v47 = vld [vmem:[%s2349_s17 + $0x50] sm:$0xff]  ;;  %v2399_v50 = vld [vmem:[%s2349_s17 + $0x58] sm:$0xff] }
  0x15   : > { %1870 = vmatpush3.msra.mxu1 %v548_v8  ;;  %v537_v52 = vld [vmem:[%s2916_s4 + $0x10] sm:$0xff]  ;;  %v536_v53 = vld [vmem:[%s2916_s4 + $0x8] sm:$0xff]  ;;  %v535_v54 = vld [vmem:[%s2916_s4] sm:$0xff] }
  0x16   : > { %1871 = vmatprep.subr.mxu1 %v2196_v5  ;;  %v656_v55 = vld [vmem:[%s2918_s6 + $0x78] sm:$0xff]  ;;  %v655_v56 = vld [vmem:[%s2918_s6 + $0x70] sm:$0xff]  ;;  %v654_v57 = vld [vmem:[%s2918_s6 + $0x68] sm:$0xff] }
  0x17   : > { %1872 = vmatpush3.msra.mxu1 %v547_v9  ;;  %v653_v58 = vld [vmem:[%s2918_s6 + $0x60] sm:$0xff]  ;;  %v652_v59 = vld [vmem:[%s2918_s6 + $0x58] sm:$0xff]  ;;  %v651_v60 = vld [vmem:[%s2918_s6 + $0x50] sm:$0xff] }
  0x18   : > { %1873 = vmatprep.subr.mxu1 %v2196_v5  ;;  %v650_v61 = vld [vmem:[%s2918_s6 + $0x48] sm:$0xff]  ;;  %v649_v62 = vld [vmem:[%s2918_s6 + $0x40] sm:$0xff]  ;;  %v648_v63 = vld [vmem:[%s2918_s6 + $0x38] sm:$0xff] }
  0x19   : > { %1874 = vmatpush3.msra.mxu1 %v546_v10  ;;  %v647_v0 = vld [vmem:[%s2918_s6 + $0x30] sm:$0xff]  ;;  %v646_v4 = vld [vmem:[%s2918_s6 + $0x28] sm:$0xff]  ;;  %v645_v6 = vld [vmem:[%s2918_s6 + $0x20] sm:$0xff] }
  0x1a   : > { %1875 = vmatprep.subr.mxu1 %v2196_v5  ;;  %v644_v7 = vld [vmem:[%s2918_s6 + $0x18] sm:$0xff]  ;;  %v1627_v8 = vld [vmem:[%s2915_s3] ss:$0 sm:$0xff] }
  0x1b   : > { %1876 = vmatpush3.msra.mxu1 %v545_v11 }
  0x1c   : > { %1877 = vmatprep.subr.mxu1 %v2196_v5 }
  0x1d   : > { %1878 = vmatpush3.msra.mxu1 %v544_v12 }
  0x1e   : > { %1879 = vmatprep.subr.mxu1 %v2196_v5 }
  0x1f   : > { %1880 = vmatpush3.msra.mxu1 %v543_v13 }
  0x20   : > { %1881 = vmatprep.subr.mxu1 %v2196_v5 }
  0x21   : > { %1882 = vmatpush3.msra.mxu1 %v542_v14 }
  0x22   : > { %1883 = vmatprep.subr.mxu1 %v2196_v5 }
  0x23   : > { %1884 = vmatpush3.msra.mxu1 %v541_v15 }
  0x24   : > { %1885 = vmatprep.subr.mxu1 %v2196_v5 }
  0x25   : > { %1886 = vmatpush3.msra.mxu1 %v540_v16 }
  0x26   : > { %1887 = vmatprep.subr.mxu1 %v2196_v5 }
  0x27   : > { %1888 = vmatpush3.msra.mxu1 %v539_v17 }
  0x28   : > { %1889 = vmatprep.subr.mxu1 %v2196_v5 }
  0x29   : > { %1890 = vmatpush3.msra.mxu1 %v538_v18 }
  0x2a   : > { %1891 = vmatprep.subr.mxu1 %v2196_v5 }
  0x2b   : > { %1892 = vmatpush3.msra.mxu1 %v537_v52 }
  0x2c   : > { %1893 = vmatprep.subr.mxu1 %v2196_v5 }
  0x2d   : > { %1894 = vmatpush3.msra.mxu1 %v536_v53  ;;  %v2508_v53 = vld [vmem:[%s2920_s8] sm:$0xff] }
  0x2e   : > { %1895 = vmatprep.subr.mxu1 %v2196_v5 }
  0x2f   : > { %1896 = vmatpush3.msra.mxu1 %v535_v54 }
  0x30   : > { %1947 = vmatprep.subr.mxu1 %v2196_v5 }
  0x8b   : > { %v404_v19 = vpop.permute.xlu0 %403  ;;  %v423_v24 = vpop.permute.xlu1 %422 }
  0x8c   : > { %v406_v26 = vmul.f32 %v404_v19, %v2352_v20  ;;  %v407_v30 = vmul.f32 %v404_v19, %v2355_v21  ;;  %v425_v33 = vmul.f32 %v423_v24, %v2364_v25  ;;  %v426_v38 = vmul.f32 %v423_v24, %v2371_v29 }
  0x8d   : > { %v408_v41 = vmul.f32 %v404_v19, %v2378_v34  ;;  %v427_v44 = vmul.f32 %v423_v24, %v2383_v39 }
  0x8f   : > { %v412_v27 = vpop.permute.xlu0 %411 }
  0x90   : > { %v414_v31 = vmul.f32 %v412_v27, %v2358_v22  ;;  %v415_v32 = vmul.f32 %v412_v27, %v2361_v23  ;;  %v416_v35 = vmul.f32 %v412_v27, %v2368_v28  ;;  %v642_v27 = vld [vmem:[%s2918_s6 + $0x8] sm:$0xff] }
  0x92   : > { %v417_v36 = vadd.f32 %v414_v31, %v406_v26  ;;  %v418_v37 = vadd.f32 %v415_v32, %v407_v30  ;;  %v419_v43 = vadd.f32 %v416_v35, %v408_v41  ;;  %v643_v26 = vld [vmem:[%s2918_s6 + $0x10] sm:$0xff]  ;;  %v641_v30 = vld [vmem:[%s2918_s6] sm:$0xff] }
  0x93   : > { %v1631_v31 = vld [vmem:[%s2917_s5] ss:$0 sm:$0xff] }
  0x94   : > { %v428_v42 = vadd.f32 %v425_v33, %v417_v36  ;;  %v429_v45 = vadd.f32 %v426_v38, %v418_v37  ;;  %v430_v48 = vadd.f32 %v427_v44, %v419_v43 }
  0x96   : > { %v431_v46 = vadd.f32 %v428_v42, %v2386_v40  ;;  %v432_v49 = vadd.f32 %v429_v45, %v2392_v47  ;;  %v433_v51 = vadd.f32 %v430_v48, %v2399_v50  ;;  %v1632_v48 = vld [vmem:[%s2919_s7] ss:$0 sm:$0xff] }
  0x98   : > { %1857 = vmatmul.mubr.msk.f32.vlgmr.msra.gmra.mxu0 %vm442_vm1, %v431_v46 }
  0x99   : > { %1859 = vmatprep.mubr.msk.f32.mxu0 %vm2197_vm0, %v2196_v5  ;;  %1907 = vmatpush3.msra.mxu0 %v656_v55 }
  0x9a   : > { %1908 = vmatprep.subr.mxu0 %v2196_v5 }
  0x9b   : > { %1909 = vmatpush3.msra.mxu0 %v655_v56 }
  0x9c   : > { %1860 = vmatmul.mubr.msk.f32.gmra.mxu0 %vm442_vm1, %v432_v49  ;;  %1910 = vmatprep.subr.mxu0 %v2196_v5 }
  0x9d   : > { %1862 = vmatprep.mubr.msk.f32.mxu0 %vm2197_vm0, %v2196_v5  ;;  %1911 = vmatpush3.msra.mxu0 %v654_v57 }
  0x9e   : > { %1912 = vmatprep.subr.mxu0 %v2196_v5 }
  0x9f   : > { %1913 = vmatpush3.msra.mxu0 %v653_v58 }
  0xa0   : > { %1863 = vmatmul.mubr.msk.f32.gmra.mxu0 %vm442_vm1, %v433_v51  ;;  %1914 = vmatprep.subr.mxu0 %v2196_v5 }
  0xa1   : > { %1938 = vmatprep.mubr.msk.f32.mxu0 %vm2197_vm0, %v2196_v5  ;;  %1915 = vmatpush3.msra.mxu0 %v652_v59  ;;  %v2514_v59 = vld [vmem:[%s2920_s8 + $0x8] sm:$0xff] }
  0xa2   : > { %1916 = vmatprep.subr.mxu0 %v2196_v5 }
  0xa3   : > { %1917 = vmatpush3.msra.mxu0 %v651_v60 }
  0xa4   : > { %1918 = vmatprep.subr.mxu0 %v2196_v5 }
  0xa5   : > { %1919 = vmatpush3.msra.mxu0 %v650_v61 }
  0xa6   : > { %1920 = vmatprep.subr.mxu0 %v2196_v5 }
  0xa7   : > { %1921 = vmatpush3.msra.mxu0 %v649_v62 }
  0xa8   : > { %1922 = vmatprep.subr.mxu0 %v2196_v5 }
  0xa9   : > { %1923 = vmatpush3.msra.mxu0 %v648_v63 }
  0xaa   : > { %1924 = vmatprep.subr.mxu0 %v2196_v5 }
  0xab   : > { %1925 = vmatpush3.msra.mxu0 %v647_v0 }
  0xac   : > { %1926 = vmatprep.subr.mxu0 %v2196_v5 }
  0xad   : > { %1927 = vmatpush3.msra.mxu0 %v646_v4  ;;  %v2520_v4 = vld [vmem:[%s2920_s8 + $0x10] sm:$0xff] }
  0xae   : > { %1928 = vmatprep.subr.mxu0 %v2196_v5 }
  0xaf   : > { %1929 = vmatpush3.msra.mxu0 %v645_v6 }
  0xb0   : > { %1930 = vmatprep.subr.mxu0 %v2196_v5 }
  0xb1   : > { %1931 = vmatpush3.msra.mxu0 %v644_v7 }
  0xb2   : > { %1932 = vmatprep.subr.mxu0 %v2196_v5 }
  0xb3   : > { %1933 = vmatpush3.msra.mxu0 %v643_v26 }
  0xb4   : > { %1934 = vmatprep.subr.mxu0 %v2196_v5 }
  0xb5   : > { %1935 = vmatpush3.msra.mxu0 %v642_v27 }
  0xb6   : > { %1936 = vmatprep.subr.mxu0 %v2196_v5 }
  0xb7   : > { %1937 = vmatpush3.msra.mxu0 %v641_v30 }
  0xb8   : > { %1958 = vmatprep.subr.mxu0 %v2196_v5 }
 0x158   : > { %v518_v9 = vpop.f32.mrf.mxu0 }
 0x159   : > { %v519_v10 = vadd.f32 %v1627_v8, %v518_v9 }
 0x15a   : > { %v1858_v11 = vpop.f32.mrf.mxu0 }
 0x15b   : > { %v532_v12 = vmax.f32 %v519_v10, 0.0  ;;  %v2532_v11 = vld [vmem:[%s2921_s9 + $0x8] sm:$0xff] }
 0x15c   : > { %v523_v13 = vpop.f32.mrf.mxu0 }
 0x15d   : > { %v524_v14 = vadd.f32 %v1627_v8, %v523_v13  ;;  %1898 = vmatmul.mubr.f32.vlgmr.msra.gmra.mxu1 %v532_v12 }
 0x15e   : > { %v1861_v15 = vpop.f32.mrf.mxu0  ;;  %1900 = vmatprep.mubr.msk.f32.mxu1 %vm2197_vm0, %v2196_v5 }
 0x15f   : > { %v533_v16 = vmax.f32 %v524_v14, 0.0  ;;  %v2538_v15 = vld [vmem:[%s2921_s9 + $0x10] sm:$0xff] }
 0x160   : > { %v528_v17 = vpop.f32.mrf.mxu0 }
 0x161   : > { %v529_v18 = vadd.f32 %v1627_v8, %v528_v17  ;;  %1901 = vmatmul.mubr.f32.gmra.mxu1 %v533_v16  ;;  %v2526_v8 = vld [vmem:[%s2921_s9] sm:$0xff] }
 0x162   : > { %v1864_v19 = vpop.f32.mrf.mxu0  ;;  %1903 = vmatprep.mubr.msk.f32.mxu1 %vm2197_vm0, %v2196_v5 }
 0x163   : > { %v534_v24 = vmax.f32 %v529_v18, 0.0 }
 0x165   : > { %1904 = vmatmul.mubr.f32.gmra.mxu1 %v534_v24 }
 0x166   : > { %1949 = vmatprep.mubr.msk.f32.mxu1 %vm2197_vm0, %v2196_v5 }
 0x21d   : > { %v624_v32 = vpop.f32.mrf.mxu1 }
 0x21e   : > { %v625_v33 = vadd.f32 %v1631_v31, %v624_v32 }
 0x21f   : > { %v1899_v35 = vpop.f32.mrf.mxu1 }
 0x220   : > { %v638_v36 = vmax.f32 %v625_v33, 0.0  ;;  %v1636_v33 = vld [vmem:[%s2914_s2 + $0x8] sm:$0xff] }
 0x221   : > { %v629_v37 = vpop.f32.mrf.mxu1  ;;  %1948 = vmatpush3.msra.mxu1 %v1636_v33  ;;  %v1643_v33 = vld [vmem:[%s2916_s4 + $0x88] sm:$0xff] }
 0x222   : > { %v630_v38 = vadd.f32 %v1631_v31, %v629_v37  ;;  %1939 = vmatmul.mubr.f32.vlgmr.msra.gmra.mxu0 %v638_v36  ;;  %1999 = vmatprep.subr.mxu1 %v2196_v5 }
 0x223   : > { %v1902_v41 = vpop.f32.mrf.mxu1  ;;  %1941 = vmatprep.mubr.msk.f32.mxu0 %vm2197_vm0, %v2196_v5 }
 0x224   : > { %v639_v42 = vmax.f32 %v630_v38, 0.0 }
 0x225   : > { %v634_v43 = vpop.f32.mrf.mxu1 }
 0x226   : > { %v635_v44 = vadd.f32 %v1631_v31, %v634_v43  ;;  %1942 = vmatmul.mubr.f32.gmra.mxu0 %v639_v42  ;;  %v1657_v43 = vld [vmem:[%s2916_s4 + $0xf8] sm:$0xff] }
 0x227   : > { %v1905_v45 = vpop.f32.mrf.mxu1  ;;  %1944 = vmatprep.mubr.msk.f32.mxu0 %vm2197_vm0, %v2196_v5  ;;  %1959 = vmatpush3.msra.mxu0 %v1657_v43  ;;  %v1670_v43 = vld [vmem:[%s2918_s6 + $0xd0] sm:$0xff] }
 0x228   : > { %v640_v46 = vmax.f32 %v635_v44, 0.0  ;;  %v1656_v44 = vld [vmem:[%s2916_s4 + $0xf0] sm:$0xff]  ;;  %1960 = vmatprep.subr.mxu0 %v2196_v5  ;;  %v1655_v45 = vld [vmem:[%s2916_s4 + $0xe8] sm:$0xff] }
 0x229   : > { %1961 = vmatpush3.msra.mxu0 %v1656_v44  ;;  %v1669_v44 = vld [vmem:[%s2918_s6 + $0xc8] sm:$0xff] }
 0x22a   : > { %1945 = vmatmul.mubr.f32.gmra.mxu0 %v640_v46  ;;  %1962 = vmatprep.subr.mxu0 %v2196_v5  ;;  %v1654_v46 = vld [vmem:[%s2916_s4 + $0xe0] sm:$0xff] }
 0x22b   : > { %1990 = vmatprep.mubr.msk.f32.mxu0 %vm2197_vm0, %v2196_v5  ;;  %1963 = vmatpush3.msra.mxu0 %v1655_v45  ;;  %v1668_v45 = vld [vmem:[%s2918_s6 + $0xc0] sm:$0xff] }
 0x22c   : > { %1964 = vmatprep.subr.mxu0 %v2196_v5 }
 0x22d   : > { %1965 = vmatpush3.msra.mxu0 %v1654_v46  ;;  %v1667_v46 = vld [vmem:[%s2918_s6 + $0xb8] sm:$0xff] }
 0x22e   : > { %1966 = vmatprep.subr.mxu0 %v2196_v5 }
 0x2e2   : > { %v730_v49 = vpop.f32.mrf.mxu0 }
 0x2e3   : > { %v731_v51 = vadd.f32 %v1632_v48, %v730_v49  ;;  %v1652_v49 = vld [vmem:[%s2916_s4 + $0xd0] sm:$0xff] }
 0x2e4   : > { %v1940_v52 = vpop.f32.mrf.mxu0 }
 0x2e5   : > { %v744_v54 = vmax.f32 %v731_v51, 0.0  ;;  %v1651_v51 = vld [vmem:[%s2916_s4 + $0xc8] sm:$0xff]  ;;  %v1650_v52 = vld [vmem:[%s2916_s4 + $0xc0] sm:$0xff] }
 0x2e6   : > { %v735_v55 = vpop.f32.mrf.mxu0 }
 0x2e7   : > { %v736_v56 = vadd.f32 %v1632_v48, %v735_v55  ;;  %v747_v57 = vmul.f32 %v744_v54, %v2508_v53  ;;  %v1649_v54 = vld [vmem:[%s2916_s4 + $0xb8] sm:$0xff]  ;;  %v1648_v55 = vld [vmem:[%s2916_s4 + $0xb0] sm:$0xff] }
 0x2e8   : > { %v1943_v58 = vpop.f32.mrf.mxu0 }
 0x2e9   : > { %v745_v60 = vmax.f32 %v736_v56, 0.0  ;;  %750 = vadd.xlane.f32.xlu1 %v747_v57  ;;  %v1647_v56 = vld [vmem:[%s2916_s4 + $0xa8] sm:$0xff]  ;;  %v1646_v57 = vld [vmem:[%s2916_s4 + $0xa0] sm:$0xff]  ;;  %v1645_v58 = vld [vmem:[%s2916_s4 + $0x98] sm:$0xff] }
 0x2ea   : > { %v740_v61 = vpop.f32.mrf.mxu0 }
 0x2eb   : > { %v741_v62 = vadd.f32 %v1632_v48, %v740_v61  ;;  %v748_v63 = vmul.f32 %v745_v60, %v2514_v59  ;;  %v1653_v48 = vld [vmem:[%s2916_s4 + $0xd8] sm:$0xff] }
 0x2ec   : > { %v1946_v0 = vpop.f32.mrf.mxu0  ;;  %1967 = vmatpush3.msra.mxu0 %v1653_v48  ;;  %v1666_v48 = vld [vmem:[%s2918_s6 + $0xb0] sm:$0xff] }
 0x2ed   : > { %v746_v6 = vmax.f32 %v741_v62, 0.0  ;;  %752 = vadd.xlane.f32.xlu0 %v748_v63  ;;  %1968 = vmatprep.subr.mxu0 %v2196_v5 }
 0x2ee   : > { %1969 = vmatpush3.msra.mxu0 %v1652_v49  ;;  %v1665_v49 = vld [vmem:[%s2918_s6 + $0xa8] sm:$0xff] }
 0x2ef   : > { %v749_v7 = vmul.f32 %v746_v6, %v2520_v4  ;;  %1970 = vmatprep.subr.mxu0 %v2196_v5 }
 0x2f0   : > { %1971 = vmatpush3.msra.mxu0 %v1651_v51  ;;  %v1664_v51 = vld [vmem:[%s2918_s6 + $0xa0] sm:$0xff] }
 0x2f1   : > { %754 = vadd.xlane.f32.xlu0 %v749_v7  ;;  %1972 = vmatprep.subr.mxu0 %v2196_v5 }
 0x2f2   : > { %1973 = vmatpush3.msra.mxu0 %v1650_v52  ;;  %v1663_v52 = vld [vmem:[%s2918_s6 + $0x98] sm:$0xff] }
 0x2f3   : > { %1974 = vmatprep.subr.mxu0 %v2196_v5 }
 0x2f4   : > { %1975 = vmatpush3.msra.mxu0 %v1649_v54  ;;  %v1638_v54 = vld [vmem:[%s2915_s3 + $0x1] ss:$0 sm:$0xff] }
 0x2f5   : > { %1976 = vmatprep.subr.mxu0 %v2196_v5 }
 0x2f6   : > { %1977 = vmatpush3.msra.mxu0 %v1648_v55 }
 0x2f7   : > { %1978 = vmatprep.subr.mxu0 %v2196_v5 }
 0x2f8   : > { %1979 = vmatpush3.msra.mxu0 %v1647_v56 }
 0x2f9   : > { %1980 = vmatprep.subr.mxu0 %v2196_v5 }
 0x2fa   : > { %1981 = vmatpush3.msra.mxu0 %v1646_v57 }
 0x2fb   : > { %1982 = vmatprep.subr.mxu0 %v2196_v5 }
 0x2fc   : > { %1983 = vmatpush3.msra.mxu0 %v1645_v58 }
 0x2fd   : > { %1984 = vmatprep.subr.mxu0 %v2196_v5 }
 0x372   : > { %v751_v9 = vpop.xlane.xlu1 %750 }
 0x373   : > { %v756_v10 = vadd.f32 %v751_v9, %v2526_v8 }
 0x375   : > { %v1633_v12 = vmul.f32 -1.442695, %v756_v10 }
 0x376   : > { %v753_v13 = vpop.xlane.xlu0 %752 }
 0x377   : > { %2148 = vpow2.f32 %v1633_v12  ;;  %v757_v14 = vadd.f32 %v753_v13, %v2532_v11 }
 0x379   : > { %v1634_v16 = vmul.f32 -1.442695, %v757_v14 }
 0x37a   : > { %v755_v17 = vpop.xlane.xlu0 %754 }
 0x37b   : > { %2150 = vpow2.f32 %v1634_v16  ;;  %v758_v18 = vadd.f32 %v755_v17, %v2538_v15 }
 0x37d   : > { %v1635_v19 = vmul.f32 -1.442695, %v758_v18 }
 0x37f   : > { %2152 = vpow2.f32 %v1635_v19 }
 0x384   : > { %v2149_v24 = vpop.eup %2148 }
 0x385   : > { %v768_v26 = vadd.f32 1.0, %v2149_v24 }
 0x387   : > { %2154 = vrcp.f32 %v768_v26 }
 0x388   : > { %v2151_v27 = vpop.eup %2150 }
 0x389   : > { %v769_v30 = vadd.f32 1.0, %v2151_v27 }
 0x38b   : > { %2156 = vrcp.f32 %v769_v30 }
 0x38c   : > { %v2153_v31 = vpop.eup %2152 }
 0x38d   : > { %v770_v32 = vadd.f32 1.0, %v2153_v31 }
 0x38f   : > { %2158 = vrcp.f32 %v770_v32  ;;  %v1644_v32 = vld [vmem:[%s2916_s4 + $0x90] sm:$0xff] }
 0x390   : > { %1985 = vmatpush3.msra.mxu0 %v1644_v32 }
 0x391   : > { %1986 = vmatprep.subr.mxu0 %v2196_v5 }
 0x392   : > { %1987 = vmatpush3.msra.mxu0 %v1643_v33 }
 0x393   : > { %1988 = vmatprep.subr.mxu0 %v2196_v5 }
 0x394   : > { %v2155_v35 = vpop.eup %2154 }
 0x395   : > { %v777_v36 = vmul.f32 %v2155_v35, %v2272_v1  ;;  %v1642_v35 = vld [vmem:[%s2916_s4 + $0x80] sm:$0xff] }
 0x396   : > { %1989 = vmatpush3.msra.mxu0 %v1642_v35 }
 0x397   : > { %782 = vperm.xlu1 %2147, %v777_v36   ;;  %2040 = vmatprep.subr.mxu0 %v2196_v5  ;;  %v1675_v36 = vld [vmem:[%s2918_s6 + $0xf8] sm:$0xff] }
 0x398   : > { %v2157_v37 = vpop.eup %2156 }
 0x399   : > { %v778_v38 = vmul.f32 %v2157_v37, %v2280_v3  ;;  %v1674_v37 = vld [vmem:[%s2918_s6 + $0xf0] sm:$0xff] }
 0x39b   : > { %790 = vperm.xlu0 %2146, %v778_v38   ;;  %v1673_v38 = vld [vmem:[%s2918_s6 + $0xe8] sm:$0xff] }
 0x39c   : > { %v2159_v41 = vpop.eup %2158 }
 0x39d   : > { %v779_v42 = vmul.f32 %v2159_v41, %v2275_v2  ;;  %v1672_v41 = vld [vmem:[%s2918_s6 + $0xe0] sm:$0xff] }
 0x39f   : > { %801 = vperm.xlu1 %2147, %v779_v42   ;;  %v1671_v42 = vld [vmem:[%s2918_s6 + $0xd8] sm:$0xff] }
 0x412   : > { %v783_v60 = vpop.permute.xlu1 %782 }
 0x413   : > { %v785_v63 = vmul.f32 %v783_v60, %v2352_v20  ;;  %v786_v7 = vmul.f32 %v783_v60, %v2355_v21  ;;  %v787_v17 = vmul.f32 %v783_v60, %v2378_v34 }
 0x416   : > { %v791_v61 = vpop.permute.xlu0 %790 }
 0x417   : > { %v793_v62 = vmul.f32 %v791_v61, %v2358_v22  ;;  %v794_v0 = vmul.f32 %v791_v61, %v2361_v23  ;;  %v795_v13 = vmul.f32 %v791_v61, %v2368_v28 }
 0x419   : > { %v796_v9 = vadd.f32 %v793_v62, %v785_v63  ;;  %v797_v14 = vadd.f32 %v794_v0, %v786_v7  ;;  %v798_v26 = vadd.f32 %v795_v13, %v787_v17  ;;  %v1660_v13 = vld [vmem:[%s2918_s6 + $0x80] sm:$0xff] }
 0x41a   : > { %v802_v6 = vpop.permute.xlu1 %801 }
 0x41b   : > { %v804_v10 = vmul.f32 %v802_v6, %v2364_v25  ;;  %v805_v12 = vmul.f32 %v802_v6, %v2371_v29  ;;  %v806_v18 = vmul.f32 %v802_v6, %v2383_v39 }
 0x41d   : > { %v807_v16 = vadd.f32 %v804_v10, %v796_v9  ;;  %v808_v19 = vadd.f32 %v805_v12, %v797_v14  ;;  %v809_v27 = vadd.f32 %v806_v18, %v798_v26  ;;  %v1662_v10 = vld [vmem:[%s2918_s6 + $0x90] sm:$0xff]  ;;  %v1661_v12 = vld [vmem:[%s2918_s6 + $0x88] sm:$0xff]  ;;  %v1659_v14 = vld [vmem:[%s2917_s5 + $0x1] ss:$0 sm:$0xff] }
 0x41f   : > { %v810_v24 = vadd.f32 %v807_v16, %v2386_v40  ;;  %v811_v30 = vadd.f32 %v808_v19, %v2392_v47  ;;  %v812_v31 = vadd.f32 %v809_v27, %v2399_v50 }
 0x421   : > { %1950 = vmatmul.mubr.msk.f32.vlgmr.msra.gmra.mxu1 %vm442_vm1, %v810_v24 }
 0x422   : > { %1952 = vmatprep.mubr.msk.f32.mxu1 %vm2197_vm0, %v2196_v5  ;;  %2000 = vmatpush3.msra.mxu1 %v1675_v36  ;;  %v1677_v36 = vld [vmem:[%s2919_s7 + $0x1] ss:$0 sm:$0xff] }
 0x423   : > { %2001 = vmatprep.subr.mxu1 %v2196_v5 }
 0x424   : > { %2002 = vmatpush3.msra.mxu1 %v1674_v37 }
 0x425   : > { %1953 = vmatmul.mubr.msk.f32.gmra.mxu1 %vm442_vm1, %v811_v30  ;;  %2003 = vmatprep.subr.mxu1 %v2196_v5 }
 0x426   : > { %1955 = vmatprep.mubr.msk.f32.mxu1 %vm2197_vm0, %v2196_v5  ;;  %2004 = vmatpush3.msra.mxu1 %v1673_v38 }
 0x427   : > { %2005 = vmatprep.subr.mxu1 %v2196_v5 }
 0x428   : > { %2006 = vmatpush3.msra.mxu1 %v1672_v41 }
 0x429   : > { %1956 = vmatmul.mubr.msk.f32.gmra.mxu1 %vm442_vm1, %v812_v31  ;;  %2007 = vmatprep.subr.mxu1 %v2196_v5 }
 0x42a   : > { %2031 = vmatprep.mubr.msk.f32.mxu1 %vm2197_vm0, %v2196_v5  ;;  %2008 = vmatpush3.msra.mxu1 %v1671_v42 }
 0x42b   : > { %2009 = vmatprep.subr.mxu1 %v2196_v5 }
 0x42c   : > { %2010 = vmatpush3.msra.mxu1 %v1670_v43 }
 0x42d   : > { %2011 = vmatprep.subr.mxu1 %v2196_v5 }
 0x42e   : > { %2012 = vmatpush3.msra.mxu1 %v1669_v44 }
 0x42f   : > { %2013 = vmatprep.subr.mxu1 %v2196_v5 }
 0x430   : > { %2014 = vmatpush3.msra.mxu1 %v1668_v45 }
 0x431   : > { %2015 = vmatprep.subr.mxu1 %v2196_v5 }
 0x432   : > { %2016 = vmatpush3.msra.mxu1 %v1667_v46 }
 0x433   : > { %2017 = vmatprep.subr.mxu1 %v2196_v5 }
 0x434   : > { %2018 = vmatpush3.msra.mxu1 %v1666_v48 }
 0x435   : > { %2019 = vmatprep.subr.mxu1 %v2196_v5 }
 0x436   : > { %2020 = vmatpush3.msra.mxu1 %v1665_v49 }
 0x437   : > { %2021 = vmatprep.subr.mxu1 %v2196_v5 }
 0x438   : > { %2022 = vmatpush3.msra.mxu1 %v1664_v51 }
 0x439   : > { %2023 = vmatprep.subr.mxu1 %v2196_v5 }
 0x43a   : > { %2024 = vmatpush3.msra.mxu1 %v1663_v52 }
 0x43b   : > { %2025 = vmatprep.subr.mxu1 %v2196_v5 }
 0x43c   : > { %2026 = vmatpush3.msra.mxu1 %v1662_v10 }
 0x43d   : > { %2027 = vmatprep.subr.mxu1 %v2196_v5 }
 0x43e   : > { %2028 = vmatpush3.msra.mxu1 %v1661_v12 }
 0x43f   : > { %2029 = vmatprep.subr.mxu1 %v2196_v5 }
 0x440   : > { %2030 = vmatpush3.msra.mxu1 %v1660_v13 }
 0x441   : > { %2051 = vmatprep.subr.mxu1 %v2196_v5 }
 0x4e1   : > { %v898_v55 = vpop.f32.mrf.mxu1 }
 0x4e2   : > { %v899_v56 = vadd.f32 %v1638_v54, %v898_v55 }
 0x4e3   : > { %v1951_v57 = vpop.f32.mrf.mxu1 }
 0x4e4   : > { %v912_v58 = vmax.f32 %v899_v56, 0.0 }
 0x4e5   : > { %v903_v60 = vpop.f32.mrf.mxu1 }
 0x4e6   : > { %v904_v61 = vadd.f32 %v1638_v54, %v903_v60  ;;  %1991 = vmatmul.mubr.f32.vlgmr.msra.gmra.mxu0 %v912_v58 }
 0x4e7   : > { %v1954_v62 = vpop.f32.mrf.mxu1  ;;  %1993 = vmatprep.mubr.msk.f32.mxu0 %vm2197_vm0, %v2196_v5 }
 0x4e8   : > { %v913_v63 = vmax.f32 %v904_v61, 0.0 }
 0x4e9   : > { %v908_v0 = vpop.f32.mrf.mxu1 }
 0x4ea   : > { %v909_v6 = vadd.f32 %v1638_v54, %v908_v0  ;;  %1994 = vmatmul.mubr.f32.gmra.mxu0 %v913_v63 }
 0x4eb   : > { %v1957_v7 = vpop.f32.mrf.mxu1  ;;  %1996 = vmatprep.mubr.msk.f32.mxu0 %vm2197_vm0, %v2196_v5 }
 0x4ec   : > { %v914_v9 = vmax.f32 %v909_v6, 0.0 }
 0x4ee   : > { %1997 = vmatmul.mubr.f32.gmra.mxu0 %v914_v9 }
 0x4ef   : > { %2042 = vmatprep.mubr.msk.f32.mxu0 %vm2197_vm0, %v2196_v5 }
 0x5a6   : > { %v1006_v16 = vpop.f32.mrf.mxu0 }
 0x5a7   : > { %v1007_v17 = vadd.f32 %v1659_v14, %v1006_v16 }
 0x5a8   : > { %v1992_v18 = vpop.f32.mrf.mxu0 }
 0x5a9   : > { %v1020_v19 = vmax.f32 %v1007_v17, 0.0  ;;  %v1681_v17 = vld [vmem:[%s2914_s2 + $0x10] sm:$0xff] }
 0x5aa   : > { %v1011_v24 = vpop.f32.mrf.mxu0  ;;  %2041 = vmatpush3.msra.mxu0 %v1681_v17  ;;  %v1683_v17 = vld [vmem:[%s2915_s3 + $0x2] ss:$0 sm:$0xff] }
 0x5ab   : > { %v1012_v26 = vadd.f32 %v1659_v14, %v1011_v24  ;;  %2032 = vmatmul.mubr.f32.vlgmr.msra.gmra.mxu1 %v1020_v19  ;;  %2092 = vmatprep.subr.mxu0 %v2196_v5 }
 0x5ac   : > { %v1995_v27 = vpop.f32.mrf.mxu0  ;;  %2034 = vmatprep.mubr.msk.f32.mxu1 %vm2197_vm0, %v2196_v5 }
 0x5ad   : > { %v1021_v30 = vmax.f32 %v1012_v26, 0.0 }
 0x5ae   : > { %v1016_v31 = vpop.f32.mrf.mxu0 }
 0x5af   : > { %v1017_v32 = vadd.f32 %v1659_v14, %v1016_v31  ;;  %2035 = vmatmul.mubr.f32.gmra.mxu1 %v1021_v30  ;;  %v1702_v31 = vld [vmem:[%s2916_s4 + $0x178] sm:$0xff] }
 0x5b0   : > { %v1998_v33 = vpop.f32.mrf.mxu0  ;;  %2037 = vmatprep.mubr.msk.f32.mxu1 %vm2197_vm0, %v2196_v5  ;;  %2052 = vmatpush3.msra.mxu1 %v1702_v31 }
 0x5b1   : > { %v1022_v35 = vmax.f32 %v1017_v32, 0.0  ;;  %v1701_v32 = vld [vmem:[%s2916_s4 + $0x170] sm:$0xff]  ;;  %2053 = vmatprep.subr.mxu1 %v2196_v5 }
 0x5b2   : > { %2054 = vmatpush3.msra.mxu1 %v1701_v32  ;;  %v1697_v33 = vld [vmem:[%s2916_s4 + $0x150] sm:$0xff] }
 0x5b3   : > { %2038 = vmatmul.mubr.f32.gmra.mxu1 %v1022_v35  ;;  %2055 = vmatprep.subr.mxu1 %v2196_v5  ;;  %v1696_v35 = vld [vmem:[%s2916_s4 + $0x148] sm:$0xff] }
 0x5b4   : > { %2083 = vmatprep.mubr.msk.f32.mxu1 %vm2197_vm0, %v2196_v5 }
 0x66b   : > { %v1114_v37 = vpop.f32.mrf.mxu1 }
 0x66c   : > { %v1115_v38 = vadd.f32 %v1677_v36, %v1114_v37  ;;  %v1694_v37 = vld [vmem:[%s2916_s4 + $0x138] sm:$0xff] }
 0x66d   : > { %v2033_v41 = vpop.f32.mrf.mxu1 }
 0x66e   : > { %v1128_v42 = vmax.f32 %v1115_v38, 0.0  ;;  %v1693_v38 = vld [vmem:[%s2916_s4 + $0x130] sm:$0xff]  ;;  %v1692_v41 = vld [vmem:[%s2916_s4 + $0x128] sm:$0xff] }
 0x66f   : > { %v1119_v43 = vpop.f32.mrf.mxu1 }
 0x670   : > { %v1120_v44 = vadd.f32 %v1677_v36, %v1119_v43  ;;  %v1131_v45 = vmul.f32 %v1128_v42, %v2508_v53  ;;  %v1691_v42 = vld [vmem:[%s2916_s4 + $0x120] sm:$0xff]  ;;  %v1690_v43 = vld [vmem:[%s2916_s4 + $0x118] sm:$0xff] }
 0x671   : > { %v2036_v46 = vpop.f32.mrf.mxu1 }
 0x672   : > { %v1129_v48 = vmax.f32 %v1120_v44, 0.0  ;;  %1134 = vadd.xlane.f32.xlu1 %v1131_v45 }
 0x673   : > { %v1124_v49 = vpop.f32.mrf.mxu1 }
 0x674   : > { %v1125_v51 = vadd.f32 %v1677_v36, %v1124_v49  ;;  %v1132_v52 = vmul.f32 %v1129_v48, %v2514_v59  ;;  %v1695_v36 = vld [vmem:[%s2916_s4 + $0x140] sm:$0xff] }
 0x675   : > { %v2039_v54 = vpop.f32.mrf.mxu1 }
 0x676   : > { %v1130_v55 = vmax.f32 %v1125_v51, 0.0  ;;  %1136 = vadd.xlane.f32.xlu0 %v1132_v52 }
 0x678   : > { %v1133_v56 = vmul.f32 %v1130_v55, %v2520_v4 }
 0x67a   : > { %1138 = vadd.xlane.f32.xlu0 %v1133_v56 }
 0x6fb   : > { %v1135_v57 = vpop.xlane.xlu1 %1134 }
 0x6fc   : > { %v1140_v58 = vadd.f32 %v1135_v57, %v2526_v8 }
 0x6fe   : > { %v1678_v60 = vmul.f32 -1.442695, %v1140_v58 }
 0x6ff   : > { %v1137_v61 = vpop.xlane.xlu0 %1136 }
 0x700   : > { %2160 = vpow2.f32 %v1678_v60  ;;  %v1141_v62 = vadd.f32 %v1137_v61, %v2532_v11 }
 0x702   : > { %v1679_v63 = vmul.f32 -1.442695, %v1141_v62 }
 0x703   : > { %v1139_v0 = vpop.xlane.xlu0 %1138 }
 0x704   : > { %2162 = vpow2.f32 %v1679_v63  ;;  %v1142_v6 = vadd.f32 %v1139_v0, %v2538_v15  ;;  %v1717_v63 = vld [vmem:[%s2918_s6 + $0x160] sm:$0xff]  ;;  %v1716_v0 = vld [vmem:[%s2918_s6 + $0x158] sm:$0xff] }
 0x706   : > { %v1680_v7 = vmul.f32 -1.442695, %v1142_v6  ;;  %v1715_v6 = vld [vmem:[%s2918_s6 + $0x150] sm:$0xff] }
 0x708   : > { %2164 = vpow2.f32 %v1680_v7  ;;  %v1714_v7 = vld [vmem:[%s2918_s6 + $0x148] sm:$0xff] }
 0x70d   : > { %v2161_v9 = vpop.eup %2160 }
 0x70e   : > { %v1152_v10 = vadd.f32 1.0, %v2161_v9  ;;  %v1713_v9 = vld [vmem:[%s2918_s6 + $0x140] sm:$0xff] }
 0x710   : > { %2166 = vrcp.f32 %v1152_v10  ;;  %v1712_v10 = vld [vmem:[%s2918_s6 + $0x138] sm:$0xff] }
 0x711   : > { %v2163_v12 = vpop.eup %2162 }
 0x712   : > { %v1153_v13 = vadd.f32 1.0, %v2163_v12  ;;  %v1711_v12 = vld [vmem:[%s2918_s6 + $0x130] sm:$0xff] }
 0x714   : > { %2168 = vrcp.f32 %v1153_v13  ;;  %v1710_v13 = vld [vmem:[%s2918_s6 + $0x128] sm:$0xff] }
 0x715   : > { %v2165_v14 = vpop.eup %2164 }
 0x716   : > { %v1154_v16 = vadd.f32 1.0, %v2165_v14  ;;  %v1709_v14 = vld [vmem:[%s2918_s6 + $0x120] sm:$0xff] }
 0x718   : > { %2170 = vrcp.f32 %v1154_v16  ;;  %v1708_v16 = vld [vmem:[%s2918_s6 + $0x118] sm:$0xff] }
 0x71d   : > { %v2167_v18 = vpop.eup %2166 }
 0x71e   : > { %v1161_v19 = vmul.f32 %v2167_v18, %v2272_v1  ;;  %v1700_v1 = vld [vmem:[%s2916_s4 + $0x168] sm:$0xff] }
 0x71f   : > { %2056 = vmatpush3.msra.mxu1 %v1700_v1 }
 0x720   : > { %1166 = vperm.xlu1 %2147, %v1161_v19   ;;  %2057 = vmatprep.subr.mxu1 %v2196_v5 }
 0x721   : > { %v2169_v24 = vpop.eup %2168 }
 0x722   : > { %v1162_v26 = vmul.f32 %v2169_v24, %v2280_v3  ;;  %v1698_v3 = vld [vmem:[%s2916_s4 + $0x158] sm:$0xff] }
 0x724   : > { %1174 = vperm.xlu0 %2146, %v1162_v26  }
 0x725   : > { %v2171_v27 = vpop.eup %2170 }
 0x726   : > { %v1163_v30 = vmul.f32 %v2171_v27, %v2275_v2  ;;  %v1699_v2 = vld [vmem:[%s2916_s4 + $0x160] sm:$0xff] }
 0x727   : > { %2058 = vmatpush3.msra.mxu1 %v1699_v2 }
 0x728   : > { %1185 = vperm.xlu1 %2147, %v1163_v30   ;;  %2059 = vmatprep.subr.mxu1 %v2196_v5 }
 0x729   : > { %2060 = vmatpush3.msra.mxu1 %v1698_v3 }
 0x72a   : > { %2061 = vmatprep.subr.mxu1 %v2196_v5 }
 0x72b   : > { %2062 = vmatpush3.msra.mxu1 %v1697_v33 }
 0x72c   : > { %2063 = vmatprep.subr.mxu1 %v2196_v5 }
 0x72d   : > { %2064 = vmatpush3.msra.mxu1 %v1696_v35  ;;  %v1707_v35 = vld [vmem:[%s2918_s6 + $0x110] sm:$0xff] }
 0x72e   : > { %2065 = vmatprep.subr.mxu1 %v2196_v5 }
 0x72f   : > { %2066 = vmatpush3.msra.mxu1 %v1695_v36  ;;  %v1706_v36 = vld [vmem:[%s2918_s6 + $0x108] sm:$0xff] }
 0x730   : > { %2067 = vmatprep.subr.mxu1 %v2196_v5 }
 0x731   : > { %2068 = vmatpush3.msra.mxu1 %v1694_v37  ;;  %v1705_v37 = vld [vmem:[%s2918_s6 + $0x100] sm:$0xff] }
 0x732   : > { %2069 = vmatprep.subr.mxu1 %v2196_v5 }
 0x733   : > { %2070 = vmatpush3.msra.mxu1 %v1693_v38  ;;  %v1704_v38 = vld [vmem:[%s2917_s5 + $0x2] ss:$0 sm:$0xff] }
 0x734   : > { %2071 = vmatprep.subr.mxu1 %v2196_v5 }
 0x735   : > { %2072 = vmatpush3.msra.mxu1 %v1692_v41 }
 0x736   : > { %2073 = vmatprep.subr.mxu1 %v2196_v5 }
 0x737   : > { %2074 = vmatpush3.msra.mxu1 %v1691_v42 }
 0x738   : > { %2075 = vmatprep.subr.mxu1 %v2196_v5 }
 0x739   : > { %2076 = vmatpush3.msra.mxu1 %v1690_v43 }
 0x73a   : > { %2077 = vmatprep.subr.mxu1 %v2196_v5 }
 0x79b   : > { %v1167_v44 = vpop.permute.xlu1 %1166 }
 0x79c   : > { %v1169_v48 = vmul.f32 %v1167_v44, %v2352_v20  ;;  %v1170_v52 = vmul.f32 %v1167_v44, %v2355_v21  ;;  %v1171_v61 = vmul.f32 %v1167_v44, %v2378_v34  ;;  %v1688_v34 = vld [vmem:[%s2916_s4 + $0x108] sm:$0xff] }
 0x79f   : > { %v1175_v45 = vpop.permute.xlu0 %1174 }
 0x7a0   : > { %v1177_v46 = vmul.f32 %v1175_v45, %v2358_v22  ;;  %v1178_v49 = vmul.f32 %v1175_v45, %v2361_v23  ;;  %v1179_v57 = vmul.f32 %v1175_v45, %v2368_v28 }
 0x7a2   : > { %v1180_v54 = vadd.f32 %v1177_v46, %v1169_v48  ;;  %v1181_v58 = vadd.f32 %v1178_v49, %v1170_v52  ;;  %v1182_v23 = vadd.f32 %v1179_v57, %v1171_v61 }
 0x7a3   : > { %v1186_v51 = vpop.permute.xlu1 %1185 }
 0x7a4   : > { %v1188_v55 = vmul.f32 %v1186_v51, %v2364_v25  ;;  %v1189_v56 = vmul.f32 %v1186_v51, %v2371_v29  ;;  %v1190_v22 = vmul.f32 %v1186_v51, %v2383_v39  ;;  %v1689_v29 = vld [vmem:[%s2916_s4 + $0x110] sm:$0xff]  ;;  %v1687_v39 = vld [vmem:[%s2916_s4 + $0x100] sm:$0xff] }
 0x7a5   : > { %2078 = vmatpush3.msra.mxu1 %v1689_v29 }
 0x7a6   : > { %v1191_v60 = vadd.f32 %v1188_v55, %v1180_v54  ;;  %v1192_v62 = vadd.f32 %v1189_v56, %v1181_v58  ;;  %v1193_v21 = vadd.f32 %v1190_v22, %v1182_v23  ;;  %2079 = vmatprep.subr.mxu1 %v2196_v5  ;;  %v1722_v56 = vld [vmem:[%s2919_s7 + $0x2] ss:$0 sm:$0xff] }
 0x7a7   : > { %2080 = vmatpush3.msra.mxu1 %v1688_v34 }
 0x7a8   : > { %v1194_v20 = vadd.f32 %v1191_v60, %v2386_v40  ;;  %v1195_v25 = vadd.f32 %v1192_v62, %v2392_v47  ;;  %v1196_v28 = vadd.f32 %v1193_v21, %v2399_v50  ;;  %2081 = vmatprep.subr.mxu1 %v2196_v5  ;;  %v1720_v40 = vld [vmem:[%s2918_s6 + $0x178] sm:$0xff]  ;;  %v1719_v47 = vld [vmem:[%s2918_s6 + $0x170] sm:$0xff]  ;;  %v1718_v50 = vld [vmem:[%s2918_s6 + $0x168] sm:$0xff] }
 0x7a9   : > { %2082 = vmatpush3.msra.mxu1 %v1687_v39 }
 0x7aa   : > { %2043 = vmatmul.mubr.msk.f32.vlgmr.msra.gmra.mxu0 %vm442_vm1, %v1194_v20 }
 0x7ab   : > { %2045 = vmatprep.mubr.msk.f32.mxu0 %vm2197_vm0, %v2196_v5  ;;  %2093 = vmatpush3.msra.mxu0 %v1720_v40 }
 0x7ac   : > { %2094 = vmatprep.subr.mxu0 %v2196_v5 }
 0x7ad   : > { %2095 = vmatpush3.msra.mxu0 %v1719_v47 }
 0x7ae   : > { %2046 = vmatmul.mubr.msk.f32.gmra.mxu0 %vm442_vm1, %v1195_v25  ;;  %2096 = vmatprep.subr.mxu0 %v2196_v5 }
 0x7af   : > { %2048 = vmatprep.mubr.msk.f32.mxu0 %vm2197_vm0, %v2196_v5  ;;  %2097 = vmatpush3.msra.mxu0 %v1718_v50 }
 0x7b0   : > { %2098 = vmatprep.subr.mxu0 %v2196_v5 }
 0x7b1   : > { %2099 = vmatpush3.msra.mxu0 %v1717_v63 }
 0x7b2   : > { %2049 = vmatmul.mubr.msk.f32.gmra.mxu0 %vm442_vm1, %v1196_v28  ;;  %2100 = vmatprep.subr.mxu0 %v2196_v5 }
 0x7b3   : > { %2124 = vmatprep.mubr.msk.f32.mxu0 %vm2197_vm0, %v2196_v5  ;;  %2101 = vmatpush3.msra.mxu0 %v1716_v0 }
 0x7b4   : > { %2102 = vmatprep.subr.mxu0 %v2196_v5 }
 0x7b5   : > { %2103 = vmatpush3.msra.mxu0 %v1715_v6 }
 0x7b6   : > { %2104 = vmatprep.subr.mxu0 %v2196_v5 }
 0x7b7   : > { %2105 = vmatpush3.msra.mxu0 %v1714_v7 }
 0x7b8   : > { %2106 = vmatprep.subr.mxu0 %v2196_v5 }
 0x7b9   : > { %2107 = vmatpush3.msra.mxu0 %v1713_v9 }
 0x7ba   : > { %2108 = vmatprep.subr.mxu0 %v2196_v5 }
 0x7bb   : > { %2109 = vmatpush3.msra.mxu0 %v1712_v10 }
 0x7bc   : > { %2110 = vmatprep.subr.mxu0 %v2196_v5 }
 0x7bd   : > { %2111 = vmatpush3.msra.mxu0 %v1711_v12 }
 0x7be   : > { %2112 = vmatprep.subr.mxu0 %v2196_v5 }
 0x7bf   : > { %2113 = vmatpush3.msra.mxu0 %v1710_v13 }
 0x7c0   : > { %2114 = vmatprep.subr.mxu0 %v2196_v5 }
 0x7c1   : > { %2115 = vmatpush3.msra.mxu0 %v1709_v14 }
 0x7c2   : > { %2116 = vmatprep.subr.mxu0 %v2196_v5 }
 0x7c3   : > { %2117 = vmatpush3.msra.mxu0 %v1708_v16 }
 0x7c4   : > { %2118 = vmatprep.subr.mxu0 %v2196_v5 }
 0x7c5   : > { %2119 = vmatpush3.msra.mxu0 %v1707_v35 }
 0x7c6   : > { %2120 = vmatprep.subr.mxu0 %v2196_v5 }
 0x7c7   : > { %2121 = vmatpush3.msra.mxu0 %v1706_v36 }
 0x7c8   : > { %2122 = vmatprep.subr.mxu0 %v2196_v5 }
 0x7c9   : > { %2123 = vmatpush3.msra.mxu0 %v1705_v37 }
 0x86a   : > { %v1282_v18 = vpop.f32.mrf.mxu0 }
 0x86b   : > { %v1283_v19 = vadd.f32 %v1683_v17, %v1282_v18 }
 0x86c   : > { %v2044_v24 = vpop.f32.mrf.mxu0 }
 0x86d   : > { %v1296_v26 = vmax.f32 %v1283_v19, 0.0  ;;  %v2186_v24 = vld [vmem:[%s2269_s18 + $0x10] sm:$0xff] }
 0x86e   : > { %v1287_v27 = vpop.f32.mrf.mxu0 }
 0x86f   : > { %v1288_v30 = vadd.f32 %v1683_v17, %v1287_v27  ;;  %2084 = vmatmul.mubr.f32.vlgmr.msra.gmra.mxu1 %v1296_v26 }
 0x870   : > { %v2047_v31 = vpop.f32.mrf.mxu0  ;;  %2086 = vmatprep.mubr.msk.f32.mxu1 %vm2197_vm0, %v2196_v5 }
 0x871   : > { %v1297_v32 = vmax.f32 %v1288_v30, 0.0 }
 0x872   : > { %v1292_v1 = vpop.f32.mrf.mxu0 }
 0x873   : > { %v1293_v2 = vadd.f32 %v1683_v17, %v1292_v1  ;;  %2087 = vmatmul.mubr.f32.gmra.mxu1 %v1297_v32  ;;  %v2185_v17 = vld [vmem:[%s2269_s18 + $0x8] sm:$0xff] }
 0x874   : > { %v2050_v3 = vpop.f32.mrf.mxu0  ;;  %2089 = vmatprep.mubr.msk.f32.mxu1 %vm2197_vm0, %v2196_v5 }
 0x875   : > { %v1298_v33 = vmax.f32 %v1293_v2, 0.0 }
 0x877   : > { %2090 = vmatmul.mubr.f32.gmra.mxu1 %v1298_v33 }
 0x92f   : > { %v1390_v41 = vpop.f32.mrf.mxu1 }
 0x930   : > { %v1391_v42 = vadd.f32 %v1704_v38, %v1390_v41 }
 0x931   : > { %v2085_v43 = vpop.f32.mrf.mxu1 }
 0x932   : > { %v1404_v44 = vmax.f32 %v1391_v42, 0.0 }
 0x933   : > { %v1395_v45 = vpop.f32.mrf.mxu1 }
 0x934   : > { %v1396_v46 = vadd.f32 %v1704_v38, %v1395_v45  ;;  %2125 = vmatmul.mubr.f32.vlgmr.msra.gmra.mxu0 %v1404_v44 }
 0x935   : > { %v2088_v48 = vpop.f32.mrf.mxu1  ;;  %2127 = vmatprep.mubr.msk.f32.mxu0 %vm2197_vm0, %v2196_v5 }
 0x936   : > { %v1405_v49 = vmax.f32 %v1396_v46, 0.0 }
 0x937   : > { %v1400_v51 = vpop.f32.mrf.mxu1 }
 0x938   : > { %v1401_v52 = vadd.f32 %v1704_v38, %v1400_v51  ;;  %2128 = vmatmul.mubr.f32.gmra.mxu0 %v1405_v49 }
 0x939   : > { %v2091_v54 = vpop.f32.mrf.mxu1  ;;  %2130 = vmatprep.mubr.msk.f32.mxu0 %vm2197_vm0, %v2196_v5 }
 0x93a   : > { %v1406_v55 = vmax.f32 %v1401_v52, 0.0 }
 0x93c   : > { %2131 = vmatmul.mubr.f32.gmra.mxu0 %v1406_v55 }
 0x9f4   : > { %v1498_v57 = vpop.f32.mrf.mxu0 }
 0x9f5   : > { %v1499_v58 = vadd.f32 %v1722_v56, %v1498_v57 }
 0x9f6   : > { %v2126_v60 = vpop.f32.mrf.mxu0 }
 0x9f7   : > { %v1512_v61 = vmax.f32 %v1499_v58, 0.0 }
 0x9f8   : > { %v1503_v22 = vpop.f32.mrf.mxu0 }
 0x9f9   : > { %v1504_v62 = vadd.f32 %v1722_v56, %v1503_v22  ;;  %v1515_v20 = vmul.f32 %v1512_v61, %v2508_v53 }
 0x9fa   : > { %v2129_v23 = vpop.f32.mrf.mxu0 }
 0x9fb   : > { %v1513_v21 = vmax.f32 %v1504_v62, 0.0  ;;  %1518 = vadd.xlane.f32.xlu1 %v1515_v20 }
 0x9fc   : > { %v1508_v25 = vpop.f32.mrf.mxu0 }
 0x9fd   : > { %v1509_v28 = vadd.f32 %v1722_v56, %v1508_v25  ;;  %v1516_v5 = vmul.f32 %v1513_v21, %v2514_v59 }
 0x9fe   : > { %v2132_v29 = vpop.f32.mrf.mxu0 }
 0x9ff   : > { %v1514_v34 = vmax.f32 %v1509_v28, 0.0  ;;  %1520 = vadd.xlane.f32.xlu0 %v1516_v5 }
 0xa01   : > { %v1517_v39 = vmul.f32 %v1514_v34, %v2520_v4 }
 0xa03   : > { %1522 = vadd.xlane.f32.xlu0 %v1517_v39 }
 0xa84   : > { %v1519_v40 = vpop.xlane.xlu1 %1518 }
 0xa85   : > { %v1524_v47 = vadd.f32 %v1519_v40, %v2526_v8 }
 0xa87   : > { %v1723_v50 = vmul.f32 -1.442695, %v1524_v47 }
 0xa88   : > { %v1521_v63 = vpop.xlane.xlu0 %1520 }
 0xa89   : > { %2172 = vpow2.f32 %v1723_v50  ;;  %v1525_v53 = vadd.f32 %v1521_v63, %v2532_v11 }
 0xa8b   : > { %v1724_v0 = vmul.f32 -1.442695, %v1525_v53 }
 0xa8c   : > { %v1523_v6 = vpop.xlane.xlu0 %1522 }
 0xa8d   : > { %2174 = vpow2.f32 %v1724_v0  ;;  %v1526_v59 = vadd.f32 %v1523_v6, %v2538_v15  ;;  %v2184_v15 = vld [vmem:[%s2269_s18] sm:$0xff] }
 0xa8f   : > { %v1725_v7 = vmul.f32 -1.442695, %v1526_v59 }
 0xa91   : > { %2176 = vpow2.f32 %v1725_v7 }
 0xa96   : > { %v2173_v9 = vpop.eup %2172 }
 0xa97   : > { %v1536_v4 = vadd.f32 1.0, %v2173_v9 }
 0xa99   : > { %2178 = vrcp.f32 %v1536_v4 }
 0xa9a   : > { %v2175_v10 = vpop.eup %2174 }
 0xa9b   : > { %v1537_v8 = vadd.f32 1.0, %v2175_v10 }
 0xa9d   : > { %2180 = vrcp.f32 %v1537_v8 }
 0xa9e   : > { %v2177_v12 = vpop.eup %2176 }
 0xa9f   : > { %v1538_v13 = vadd.f32 1.0, %v2177_v12 }
 0xaa1   : > { %2182 = vrcp.f32 %v1538_v13 }
 0xaa6   : > { %v2179_v11 = vpop.eup %2178 }
 0xaa7   : > { %v1545_v14 = vmul.f32 %v2184_v15, %v2179_v11 }
 0xaa9   : > { %1549 = vst.msk [vmem:[%s379_s29] sm:$0xff] %vm1548_vm2, %v1545_v14 }
 0xaaa   : > { %v2181_v16 = vpop.eup %2180 }
 0xaab   : > { %v1546_v18 = vmul.f32 %v2185_v17, %v2181_v16 }
 0xaad   : > { %1550 = vst.msk [vmem:[%s379_s29 + $0x8] sm:$0xff] %vm1548_vm2, %v1546_v18 }
 0xaae   : > { %v2183_v19 = vpop.eup %2182 }
 0xaaf   : > { %v1547_v26 = vmul.f32 %v2186_v24, %v2183_v19 }
 0xab1   : > { %1551 = vst.msk [vmem:[%s379_s29 + $0x10] sm:$0xff] %vm1548_vm2, %v1547_v26 }
 0xab2 PF: > { %s20_s13 = sadd.s32 1, %s2193_s13  }
 0xab3   : > { %p17_p4 = scmp.ge.s32.totalorder %s20_s13, 4  }
 0xab5   :  { %19 = sbr.rel (!%p17_p4) target bundleno = 1 (0x1), region = 105 }

</bundles_post_ra>
